<compile_context>
chip_gen: v7x
topology: tpu7x:2x2x1
jax: 0.10.0
libtpu: 0.0.40
codegen_flags: <defaults>
</compile_context>

<pallas_src>
import functools
import math

import jax
import jax.numpy as jnp
from jax.experimental import pallas as pl
from jax.experimental.pallas import tpu as pltpu


def _leaky_relu(x, slope=0.01):
    return jnp.where(x > 0, x, slope * x)


def _round_up(n, m):
    return ((n + m - 1) // m) * m


def _pad_to(x, shape):
    return jnp.pad(x, [(0, s - d) for d, s in zip(x.shape, shape)])


def _dot(x, w_ref, b_ref):
    # bf16 MXU path (weights stored bf16), f32 accumulation, f32 bias add.
    return jnp.dot(x.astype(w_ref.dtype), w_ref[...],
                   preferred_element_type=jnp.float32) + b_ref[...]


# ----------------------------- fused kernel -----------------------------
def hnp_fused_kernel(se_ref, eps_ref, sel_ref,
                     w1_ref, b1_ref, w2_ref, b2_ref, w3_ref, b3_ref,
                     wh_ref, bh_ref, wms_ref, bms_ref, whtd_ref, bhtd_ref,
                     loss_ref, *, pos_num, margin, z_pad, ce, ce_pad):
    # se streamed as bf16; upcast once, keep all elementwise math in f32 (v5e).
    se = se_ref[...].astype(jnp.float32)               # [Bt, N, 2, C*E]
    bt, n = se.shape[0], se.shape[1]
    n_ctx = sel_ref.shape[1]

    hmt = se[:, :, 0] - se[:, :, 1]                    # h - t, [Bt, N, C*E]

    # TODO(synk): LSTM_attn (relation_learner) not provided; deterministic
    # stand-in rel_emb = mean(t - h) over the support dimension.
    r = -jnp.mean(hmt, axis=1)                         # [Bt, C*E]

    # --- RelationLatentEncoder (constant label==1 feature folded into b1) ---
    # TODO(synk): nn.Dropout(p=0.5) omitted (eval-mode identity).
    a1 = _leaky_relu(_dot(r, w1_ref, b1_ref))
    a2 = _leaky_relu(_dot(a1, w2_ref, b2_ref))
    latent_r = _dot(a2, w3_ref, b3_ref)                # [Bt, Rp]

    # --- DistributionEncoder + Normal.rsample (mean over S==1 is identity) ---
    hid = jnp.maximum(_dot(latent_r, wh_ref, bh_ref), 0.0)
    musig = _dot(hid, wms_ref, bms_ref)                # [Bt, 2*Zp], aligned halves
    mu = musig[:, :z_pad]
    sigma = 0.1 + 0.9 * jax.nn.sigmoid(musig[:, z_pad:])
    z = mu + sigma * eps_ref[...]                      # rsample(); padded lanes = 0
    # TODO(synk): Flow / HMCModule not provided; z passes through, kld = 0 in wrapper.

    # --- EmbeddingModule: h + head(z) + r - t - tail(z) = (h-t) + r + (head-tail)(z)
    zhtd = _dot(z, whtd_ref, bhtd_ref)                 # [Bt, ce_pad + 128]
    zdelta = zhtd[:, :ce]                              # tiled head(z)-tail(z)
    d_r = zhtd[:, ce_pad:ce_pad + 1]                   # dr(z), vreg-boundary slice

    diff = hmt + (r + zdelta)[:, None, :]              # [Bt, N, C*E]
    d2 = (diff * diff).reshape(bt * n, ce)             # lane-dense rows
    # per-context sum over E on the MXU via the precomputed ones selector
    tmp = jnp.sqrt(jnp.dot(d2, sel_ref[...], preferred_element_type=jnp.float32))
    dd = tmp.reshape(bt, n, n_ctx) - (d_r * d_r)[:, :, None]
    score = -jnp.sqrt(jnp.sum(dd * dd, axis=-1))       # [Bt, N]

    # MarginRankingLoss(margin), target = 1 (1:1 pairing, pos_num == N - pos_num)
    pos = score[:, :pos_num]
    neg = score[:, pos_num:]
    partial = jnp.mean(jnp.maximum(neg - pos + margin, 0.0))
    # lane-dense (1,8,128) partial-loss tile per grid step; wrapper reads [i,0,0]
    loss_ref[...] = jnp.broadcast_to(partial, loss_ref.shape)


# ------------------------------- wrapper -------------------------------
def _pick_b_tile(batch, cap):
    # TODO(synk): size cap per generation (halve on v7x: 64 MiB VMEM vs 128).
    bt = min(batch, cap)
    while batch % bt != 0:
        bt -= 1
    return bt


def _hnp_forward(support_emb, eps, prep, pos_num, margin):
    # TODO(synk): RelationalPathGNN not provided; support_emb stands in for its output.
    B, N, _, C, E = support_emb.shape
    assert N - pos_num == pos_num, \
        "MarginRankingLoss pairing requires pos_num == N - pos_num"
    ce = C * E
    ce_pad = _round_up(ce, 128)
    z_pad = prep["wms"].shape[1] // 2

    # dominant HBM traffic streamed bf16 (upcast to f32 inside the kernel)
    se = support_emb.reshape(B, N, 2, ce).astype(jnp.bfloat16)
    eps_p = _pad_to(eps, (B, z_pad))                   # zero-padded lanes -> z stays 0

    b_tile = _pick_b_tile(B, cap=256)
    n_blk = B // b_tile

    kernel = functools.partial(hnp_fused_kernel, pos_num=int(pos_num),
                               margin=float(margin), z_pad=z_pad,
                               ce=ce, ce_pad=ce_pad)

    wnames = ("w1", "b1", "w2", "b2", "w3", "b3", "wh", "bh",
              "wms", "bms", "whtd", "bhtd")
    weights = [prep[k] for k in wnames]

    def const_spec(a):                                 # weights resident across steps
        return pl.BlockSpec(a.shape, lambda i: (0,) * a.ndim)

    in_specs = ([pl.BlockSpec((b_tile, N, 2, ce), lambda i: (i, 0, 0, 0)),
                 pl.BlockSpec((b_tile, z_pad), lambda i: (i, 0)),
                 const_spec(prep["sel"])]
                + [const_spec(a) for a in weights])

    # advisory cost hint for the XLA scheduler
    flops = (2 * B * sum(int(prep[k].shape[0] * prep[k].shape[1])
                         for k in ("w1", "w2", "w3", "wh", "wms", "whtd"))
             + 2 * B * N * ce * (C + 1) + 12 * B * N * ce)
    transcendentals = B * 2 * z_pad + B * N * (C + 1)
    bytes_accessed = (se.size * 2 + eps_p.size * 4 + prep["sel"].size * 4
                      + sum(int(a.size) * a.dtype.itemsize for a in weights)
                      + n_blk * 8 * 128 * 4)

    partials = pl.pallas_call(
        kernel,
        grid=(n_blk,),
        out_shape=jax.ShapeDtypeStruct((n_blk, 8, 128), jnp.float32),
        in_specs=in_specs,
        out_specs=pl.BlockSpec((1, 8, 128), lambda i: (i, 0, 0)),
        compiler_params=pltpu.CompilerParams(
            dimension_semantics=("parallel",),          # v7x: both TensorCores
            vmem_limit_bytes=32 * 1024 * 1024),
        cost_estimate=pl.CostEstimate(flops=int(flops),
                                      transcendentals=int(transcendentals),
                                      bytes_accessed=int(bytes_accessed)),
    )(se, eps_p, prep["sel"], *weights)

    loss = jnp.mean(partials[:, 0, 0])   # equal-sized blocks -> exact mean of means
    # TODO(synk): Flow / HMCModule not provided; KL(prior||prior) = 0.
    kld = jnp.float32(0.0)
    return loss, kld


hnp_forward = jax.jit(_hnp_forward, static_argnames=("pos_num", "margin"))


# ------------------------------- params -------------------------------
def _linear(key, fan_in, fan_out):
    kw, kb = jax.random.split(key)
    bound = 1.0 / math.sqrt(fan_in)
    w = jax.random.uniform(kw, (fan_in, fan_out), jnp.float32, -bound, bound)
    b = jax.random.uniform(kb, (1, fan_out), jnp.float32, -bound, bound)
    return w, b


def init_params(key, embed_dim, z_dim, r_dim, h1, h2):
    """Module-faithful parameter shapes (stored as [in, out])."""
    ks = jax.random.split(key, 9)
    p = {"latent": {}, "dist": {}, "emb": {}}
    p["latent"]["w1"], p["latent"]["b1"] = _linear(ks[0], 2 * embed_dim + 1, h1)
    p["latent"]["w2"], p["latent"]["b2"] = _linear(ks[1], h1, h2)
    p["latent"]["w3"], p["latent"]["b3"] = _linear(ks[2], h2, r_dim)
    p["dist"]["wh"], p["dist"]["bh"] = _linear(ks[3], r_dim, r_dim)
    p["dist"]["wmu"], p["dist"]["bmu"] = _linear(ks[4], r_dim, z_dim)
    p["dist"]["ws"], p["dist"]["bs"] = _linear(ks[5], r_dim, z_dim)
    p["emb"]["whe"], p["emb"]["bhe"] = _linear(ks[6], z_dim, embed_dim)
    p["emb"]["wte"], p["emb"]["bte"] = _linear(ks[7], z_dim, embed_dim)
    p["emb"]["wdr"], p["emb"]["bdr"] = _linear(ks[8], z_dim, 1)
    return p


def prepare_params(p, emb_dim, z_dim, n_ctx=2, use_bf16=True):
    """Kernel-friendly repack: label fold, zero-pad every merged column block to
    128-lane (vreg) boundaries, merge shared-LHS matmuls, bf16 cast of all
    weights (f32 accumulation kept), precompute the ones-selector. Exact except
    the bf16 weight casts."""
    lat, dist, emb = p["latent"], p["dist"], p["emb"]
    ce = n_ctx * emb_dim
    cep = _round_up(ce, 128)
    zp = _round_up(z_dim, 128)
    r_dim = dist["wh"].shape[0]
    rp = _round_up(r_dim, 128)
    h1, h2 = lat["w1"].shape[1], lat["w2"].shape[1]
    h1p, h2p = _round_up(h1, 128), _round_up(h2, 128)

    # fold the constant label == 1 feature into the rel_fc1 bias
    w1 = _pad_to(lat["w1"][:ce, :], (ce, h1p))
    b1 = _pad_to(lat["b1"] + lat["w1"][ce:ce + 1, :], (1, h1p))
    w2 = _pad_to(lat["w2"], (h1p, h2p))
    b2 = _pad_to(lat["b2"], (1, h2p))
    w3 = _pad_to(lat["w3"], (h2p, rp))
    b3 = _pad_to(lat["b3"], (1, rp))

    wh = _pad_to(dist["wh"], (rp, rp))
    bh = _pad_to(dist["bh"], (1, rp))

    # merged hidden_to_mu | hidden_to_sigma, each half padded to zp lanes
    wms = jnp.concatenate([_pad_to(dist["wmu"], (rp, zp)),
                           _pad_to(dist["ws"], (rp, zp))], axis=1)      # [Rp, 2*Zp]
    bms = jnp.concatenate([_pad_to(dist["bmu"], (1, zp)),
                           _pad_to(dist["bs"], (1, zp))], axis=1)

    # head/tail enter only via head(z)-tail(z): fold, tile over context slots,
    # pad to cep lanes, put dr at column cep (start of its own vreg block).
    wdiff = _pad_to(jnp.tile(emb["whe"] - emb["wte"], (1, n_ctx)), (z_dim, cep))
    bdiff = _pad_to(jnp.tile(emb["bhe"] - emb["bte"], (1, n_ctx)), (1, cep))
    whtd = _pad_to(jnp.concatenate([wdiff, _pad_to(emb["wdr"], (z_dim, 128))],
                                   axis=1), (zp, cep + 128))            # [Zp, cep+128]
    bhtd = jnp.concatenate([bdiff, _pad_to(emb["bdr"], (1, 128))], axis=1)

    # precomputed ones-selector: per-context sum over E on the MXU
    off = jnp.arange(ce)[:, None] - jnp.arange(n_ctx)[None, :] * emb_dim
    sel = ((off >= 0) & (off < emb_dim)).astype(jnp.float32)            # [C*E, C]

    wdt = jnp.bfloat16 if use_bf16 else jnp.float32
    return dict(w1=w1.astype(wdt), b1=b1, w2=w2.astype(wdt), b2=b2,
                w3=w3.astype(wdt), b3=b3, wh=wh.astype(wdt), bh=bh,
                wms=wms.astype(wdt), bms=bms, whtd=whtd.astype(wdt), bhtd=bhtd,
                sel=sel)


# -------------------------------- demo --------------------------------
if __name__ == "__main__":
    B, N, C, E = 2, 8, 2, 32        # tasks, support triples, context slots, embed_dim
    Z = R = E                        # z_dim == r_dim == embed_dim
    POS = 4                          # pos_num (N - POS must equal POS)
    H1, H2 = 500, 200                # RelationLatentEncoder hidden sizes (as in module)
    MARGIN = 1.0

    key = jax.random.PRNGKey(0)
    k_inp, k_eps, k_par = jax.random.split(key, 3)
    support_emb = jax.random.normal(k_inp, (B, N, 2, C, E), jnp.float32)
    eps = jax.random.normal(k_eps, (B, Z), jnp.float32)     # Normal.rsample noise
    params = init_params(k_par, E, Z, R, H1, H2)
    prep = prepare_params(params, emb_dim=E, z_dim=Z, n_ctx=C, use_bf16=True)

    loss, kld = hnp_forward(support_emb, eps, prep, pos_num=POS, margin=MARGIN)
    jax.block_until_ready(loss)
    jax.block_until_ready(kld)
    print("KERNEL_OK")
</pallas_src>

<mosaic_0001>
module attributes {stable_mosaic.version = 11 : i64} {
  func.func @hnp_fused_kernel(%arg0: i32, %arg1: memref<2x8x2x64xbf16, #tpu.memory_space<vmem>>, %arg2: memref<2x128xf32, #tpu.memory_space<vmem>>, %arg3: memref<64x2xf32, #tpu.memory_space<vmem>>, %arg4: memref<64x512xbf16, #tpu.memory_space<vmem>>, %arg5: memref<1x512xf32, #tpu.memory_space<vmem>>, %arg6: memref<512x256xbf16, #tpu.memory_space<vmem>>, %arg7: memref<1x256xf32, #tpu.memory_space<vmem>>, %arg8: memref<256x128xbf16, #tpu.memory_space<vmem>>, %arg9: memref<1x128xf32, #tpu.memory_space<vmem>>, %arg10: memref<128x128xbf16, #tpu.memory_space<vmem>>, %arg11: memref<1x128xf32, #tpu.memory_space<vmem>>, %arg12: memref<128x256xbf16, #tpu.memory_space<vmem>>, %arg13: memref<1x256xf32, #tpu.memory_space<vmem>>, %arg14: memref<128x256xbf16, #tpu.memory_space<vmem>>, %arg15: memref<1x256xf32, #tpu.memory_space<vmem>>, %arg16: memref<1x8x128xf32, #tpu.memory_space<vmem>>) attributes {dimension_semantics = [#tpu.dimension_semantics<parallel>], iteration_bounds = array<i64: 1>, scalar_prefetch = 0 : i64, scratch_operands = 0 : i64, tpu.core_type = #tpu.core_type<tc>, window_params = [{transform_indices = @transform_0, window_bounds = array<i64: 2, 8, 2, 64>}, {transform_indices = @transform_1, window_bounds = array<i64: 2, 128>}, {pipeline_mode = #tpu.pipeline_mode<synchronous>, transform_indices = @transform_2, window_bounds = array<i64: 64, 2>}, {pipeline_mode = #tpu.pipeline_mode<synchronous>, transform_indices = @transform_3, window_bounds = array<i64: 64, 512>}, {pipeline_mode = #tpu.pipeline_mode<synchronous>, transform_indices = @transform_4, window_bounds = array<i64: 1, 512>}, {pipeline_mode = #tpu.pipeline_mode<synchronous>, transform_indices = @transform_5, window_bounds = array<i64: 512, 256>}, {pipeline_mode = #tpu.pipeline_mode<synchronous>, transform_indices = @transform_6, window_bounds = array<i64: 1, 256>}, {pipeline_mode = #tpu.pipeline_mode<synchronous>, transform_indices = @transform_7, window_bounds = array<i64: 256, 128>}, {pipeline_mode = #tpu.pipeline_mode<synchronous>, transform_indices = @transform_8, window_bounds = array<i64: 1, 128>}, {pipeline_mode = #tpu.pipeline_mode<synchronous>, transform_indices = @transform_9, window_bounds = array<i64: 128, 128>}, {pipeline_mode = #tpu.pipeline_mode<synchronous>, transform_indices = @transform_10, window_bounds = array<i64: 1, 128>}, {pipeline_mode = #tpu.pipeline_mode<synchronous>, transform_indices = @transform_11, window_bounds = array<i64: 128, 256>}, {pipeline_mode = #tpu.pipeline_mode<synchronous>, transform_indices = @transform_12, window_bounds = array<i64: 1, 256>}, {pipeline_mode = #tpu.pipeline_mode<synchronous>, transform_indices = @transform_13, window_bounds = array<i64: 128, 256>}, {pipeline_mode = #tpu.pipeline_mode<synchronous>, transform_indices = @transform_14, window_bounds = array<i64: 1, 256>}, {transform_indices = @transform_15, window_bounds = array<i64: 1, 8, 128>}]} {
    %c0 = arith.constant 0 : index
    %c0_0 = arith.constant 0 : index
    %c0_1 = arith.constant 0 : index
    %c0_2 = arith.constant 0 : index
    %0 = vector.load %arg1[%c0, %c0_0, %c0_1, %c0_2] : memref<2x8x2x64xbf16, #tpu.memory_space<vmem>>, vector<2x8x2x64xbf16>
    %1 = arith.extf %0 : vector<2x8x2x64xbf16> to vector<2x8x2x64xf32>
    %2 = vector.extract_strided_slice %1 {offsets = [0, 0, 0, 0], sizes = [2, 8, 1, 64], strides = [1, 1, 1, 1]} : vector<2x8x2x64xf32> to vector<2x8x1x64xf32>
    %3 = vector.shape_cast %2 : vector<2x8x1x64xf32> to vector<2x8x64xf32>
    %4 = vector.extract_strided_slice %1 {offsets = [0, 0, 1, 0], sizes = [2, 8, 1, 64], strides = [1, 1, 1, 1]} : vector<2x8x2x64xf32> to vector<2x8x1x64xf32>
    %5 = vector.shape_cast %4 : vector<2x8x1x64xf32> to vector<2x8x64xf32>
    %6 = arith.subf %3, %5 : vector<2x8x64xf32>
    %cst = arith.constant dense<0.000000e+00> : vector<2x64xf32>
    %7 = vector.multi_reduction <add>, %6, %cst [1] : vector<2x8x64xf32> to vector<2x64xf32>
    %cst_3 = arith.constant 8.000000e+00 : f32
    %8 = vector.broadcast %cst_3 : f32 to vector<2x64xf32>
    %9 = arith.divf %7, %8 : vector<2x64xf32>
    %cst_4 = arith.constant 0.000000e+00 : f32
    %10 = vector.broadcast %cst_4 : f32 to vector<2x64xf32>
    %11 = arith.subf %10, %9 : vector<2x64xf32>
    %12 = arith.truncf %11 : vector<2x64xf32> to vector<2x64xbf16>
    %c0_5 = arith.constant 0 : index
    %c0_6 = arith.constant 0 : index
    %13 = vector.load %arg4[%c0_5, %c0_6] : memref<64x512xbf16, #tpu.memory_space<vmem>>, vector<64x512xbf16>
    %cst_7 = arith.constant dense<0.000000e+00> : vector<2x512xf32>
    %14 = tpu.matmul %12, %13, %cst_7 {dimension_numbers = #tpu.dot_dimension_numbers<[1], [0], [0], [1], [0, 0, 1, 1], [], []>} : vector<2x64xbf16>, vector<64x512xbf16>, vector<2x512xf32> -> vector<2x512xf32>
    %c0_8 = arith.constant 0 : index
    %c0_9 = arith.constant 0 : index
    %15 = vector.load %arg5[%c0_8, %c0_9] : memref<1x512xf32, #tpu.memory_space<vmem>>, vector<1x512xf32>
    %16 = vector.broadcast %15 : vector<1x512xf32> to vector<2x512xf32>
    %17 = arith.addf %14, %16 : vector<2x512xf32>
    %cst_10 = arith.constant 0.000000e+00 : f32
    %18 = vector.broadcast %cst_10 : f32 to vector<2x512xf32>
    %19 = arith.cmpf ogt, %17, %18 : vector<2x512xf32>
    %cst_11 = arith.constant 0.00999999977 : f32
    %20 = vector.broadcast %cst_11 : f32 to vector<2x512xf32>
    %21 = arith.mulf %20, %17 : vector<2x512xf32>
    %22 = arith.select %19, %17, %21 : vector<2x512xi1>, vector<2x512xf32>
    %23 = arith.truncf %22 : vector<2x512xf32> to vector<2x512xbf16>
    %c0_12 = arith.constant 0 : index
    %c0_13 = arith.constant 0 : index
    %24 = vector.load %arg6[%c0_12, %c0_13] : memref<512x256xbf16, #tpu.memory_space<vmem>>, vector<512x256xbf16>
    %cst_14 = arith.constant dense<0.000000e+00> : vector<2x256xf32>
    %25 = tpu.matmul %23, %24, %cst_14 {dimension_numbers = #tpu.dot_dimension_numbers<[1], [0], [0], [1], [0, 0, 1, 1], [], []>} : vector<2x512xbf16>, vector<512x256xbf16>, vector<2x256xf32> -> vector<2x256xf32>
    %c0_15 = arith.constant 0 : index
    %c0_16 = arith.constant 0 : index
    %26 = vector.load %arg7[%c0_15, %c0_16] : memref<1x256xf32, #tpu.memory_space<vmem>>, vector<1x256xf32>
    %27 = vector.broadcast %26 : vector<1x256xf32> to vector<2x256xf32>
    %28 = arith.addf %25, %27 : vector<2x256xf32>
    %cst_17 = arith.constant 0.000000e+00 : f32
    %29 = vector.broadcast %cst_17 : f32 to vector<2x256xf32>
    %30 = arith.cmpf ogt, %28, %29 : vector<2x256xf32>
    %cst_18 = arith.constant 0.00999999977 : f32
    %31 = vector.broadcast %cst_18 : f32 to vector<2x256xf32>
    %32 = arith.mulf %31, %28 : vector<2x256xf32>
    %33 = arith.select %30, %28, %32 : vector<2x256xi1>, vector<2x256xf32>
    %34 = arith.truncf %33 : vector<2x256xf32> to vector<2x256xbf16>
    %c0_19 = arith.constant 0 : index
    %c0_20 = arith.constant 0 : index
    %35 = vector.load %arg8[%c0_19, %c0_20] : memref<256x128xbf16, #tpu.memory_space<vmem>>, vector<256x128xbf16>
    %cst_21 = arith.constant dense<0.000000e+00> : vector<2x128xf32>
    %36 = tpu.matmul %34, %35, %cst_21 {dimension_numbers = #tpu.dot_dimension_numbers<[1], [0], [0], [1], [0, 0, 1, 1], [], []>} : vector<2x256xbf16>, vector<256x128xbf16>, vector<2x128xf32> -> vector<2x128xf32>
    %c0_22 = arith.constant 0 : index
    %c0_23 = arith.constant 0 : index
    %37 = vector.load %arg9[%c0_22, %c0_23] : memref<1x128xf32, #tpu.memory_space<vmem>>, vector<1x128xf32>
    %38 = vector.broadcast %37 : vector<1x128xf32> to vector<2x128xf32>
    %39 = arith.addf %36, %38 : vector<2x128xf32>
    %40 = arith.truncf %39 : vector<2x128xf32> to vector<2x128xbf16>
    %c0_24 = arith.constant 0 : index
    %c0_25 = arith.constant 0 : index
    %41 = vector.load %arg10[%c0_24, %c0_25] : memref<128x128xbf16, #tpu.memory_space<vmem>>, vector<128x128xbf16>
    %cst_26 = arith.constant dense<0.000000e+00> : vector<2x128xf32>
    %42 = tpu.matmul %40, %41, %cst_26 {dimension_numbers = #tpu.dot_dimension_numbers<[1], [0], [0], [1], [0, 0, 1, 1], [], []>} : vector<2x128xbf16>, vector<128x128xbf16>, vector<2x128xf32> -> vector<2x128xf32>
    %c0_27 = arith.constant 0 : index
    %c0_28 = arith.constant 0 : index
    %43 = vector.load %arg11[%c0_27, %c0_28] : memref<1x128xf32, #tpu.memory_space<vmem>>, vector<1x128xf32>
    %44 = vector.broadcast %43 : vector<1x128xf32> to vector<2x128xf32>
    %45 = arith.addf %42, %44 : vector<2x128xf32>
    %cst_29 = arith.constant 0.000000e+00 : f32
    %46 = vector.broadcast %cst_29 : f32 to vector<2x128xf32>
    %47 = arith.maximumf %45, %46 : vector<2x128xf32>
    %48 = arith.truncf %47 : vector<2x128xf32> to vector<2x128xbf16>
    %c0_30 = arith.constant 0 : index
    %c0_31 = arith.constant 0 : index
    %49 = vector.load %arg12[%c0_30, %c0_31] : memref<128x256xbf16, #tpu.memory_space<vmem>>, vector<128x256xbf16>
    %cst_32 = arith.constant dense<0.000000e+00> : vector<2x256xf32>
    %50 = tpu.matmul %48, %49, %cst_32 {dimension_numbers = #tpu.dot_dimension_numbers<[1], [0], [0], [1], [0, 0, 1, 1], [], []>} : vector<2x128xbf16>, vector<128x256xbf16>, vector<2x256xf32> -> vector<2x256xf32>
    %c0_33 = arith.constant 0 : index
    %c0_34 = arith.constant 0 : index
    %51 = vector.load %arg13[%c0_33, %c0_34] : memref<1x256xf32, #tpu.memory_space<vmem>>, vector<1x256xf32>
    %52 = vector.broadcast %51 : vector<1x256xf32> to vector<2x256xf32>
    %53 = arith.addf %50, %52 : vector<2x256xf32>
    %54 = vector.extract_strided_slice %53 {offsets = [0, 0], sizes = [2, 128], strides = [1, 1]} : vector<2x256xf32> to vector<2x128xf32>
    %55 = vector.extract_strided_slice %53 {offsets = [0, 128], sizes = [2, 128], strides = [1, 1]} : vector<2x256xf32> to vector<2x128xf32>
    %56 = arith.negf %55 : vector<2x128xf32>
    %57 = math.exp %56 : vector<2x128xf32>
    %cst_35 = arith.constant 1.000000e+00 : f32
    %58 = vector.broadcast %cst_35 : f32 to vector<2x128xf32>
    %59 = arith.addf %58, %57 : vector<2x128xf32>
    %60 = arith.divf %58, %59 : vector<2x128xf32>
    %cst_36 = arith.constant 0.899999976 : f32
    %61 = vector.broadcast %cst_36 : f32 to vector<2x128xf32>
    %62 = arith.mulf %61, %60 : vector<2x128xf32>
    %cst_37 = arith.constant 1.000000e-01 : f32
    %63 = vector.broadcast %cst_37 : f32 to vector<2x128xf32>
    %64 = arith.addf %63, %62 : vector<2x128xf32>
    %c0_38 = arith.constant 0 : index
    %c0_39 = arith.constant 0 : index
    %65 = vector.load %arg2[%c0_38, %c0_39] : memref<2x128xf32, #tpu.memory_space<vmem>>, vector<2x128xf32>
    %66 = arith.mulf %64, %65 : vector<2x128xf32>
    %67 = arith.addf %54, %66 : vector<2x128xf32>
    %68 = arith.truncf %67 : vector<2x128xf32> to vector<2x128xbf16>
    %c0_40 = arith.constant 0 : index
    %c0_41 = arith.constant 0 : index
    %69 = vector.load %arg14[%c0_40, %c0_41] : memref<128x256xbf16, #tpu.memory_space<vmem>>, vector<128x256xbf16>
    %cst_42 = arith.constant dense<0.000000e+00> : vector<2x256xf32>
    %70 = tpu.matmul %68, %69, %cst_42 {dimension_numbers = #tpu.dot_dimension_numbers<[1], [0], [0], [1], [0, 0, 1, 1], [], []>} : vector<2x128xbf16>, vector<128x256xbf16>, vector<2x256xf32> -> vector<2x256xf32>
    %c0_43 = arith.constant 0 : index
    %c0_44 = arith.constant 0 : index
    %71 = vector.load %arg15[%c0_43, %c0_44] : memref<1x256xf32, #tpu.memory_space<vmem>>, vector<1x256xf32>
    %72 = vector.broadcast %71 : vector<1x256xf32> to vector<2x256xf32>
    %73 = arith.addf %70, %72 : vector<2x256xf32>
    %74 = vector.extract_strided_slice %73 {offsets = [0, 0], sizes = [2, 64], strides = [1, 1]} : vector<2x256xf32> to vector<2x64xf32>
    %75 = vector.extract_strided_slice %73 {offsets = [0, 128], sizes = [2, 1], strides = [1, 1]} : vector<2x256xf32> to vector<2x1xf32>
    %76 = arith.addf %11, %74 : vector<2x64xf32>
    %77 = vector.shape_cast %76 : vector<2x64xf32> to vector<2x1x64xf32>
    %78 = vector.broadcast %77 : vector<2x1x64xf32> to vector<2x8x64xf32>
    %79 = arith.addf %6, %78 : vector<2x8x64xf32>
    %80 = arith.mulf %79, %79 : vector<2x8x64xf32>
    %81 = vector.shape_cast %80 : vector<2x8x64xf32> to vector<16x64xf32>
    %c0_45 = arith.constant 0 : index
    %c0_46 = arith.constant 0 : index
    %82 = vector.load %arg3[%c0_45, %c0_46] : memref<64x2xf32, #tpu.memory_space<vmem>>, vector<64x2xf32>
    %cst_47 = arith.constant dense<0.000000e+00> : vector<16x2xf32>
    %83 = tpu.matmul %81, %82, %cst_47 {dimension_numbers = #tpu.dot_dimension_numbers<[1], [0], [0], [1], [0, 0, 1, 1], [], []>} : vector<16x64xf32>, vector<64x2xf32>, vector<16x2xf32> -> vector<16x2xf32>
    %84 = math.sqrt %83 : vector<16x2xf32>
    %85 = vector.shape_cast %84 : vector<16x2xf32> to vector<2x8x2xf32>
    %86 = arith.mulf %75, %75 : vector<2x1xf32>
    %87 = vector.shape_cast %86 : vector<2x1xf32> to vector<2x1x1xf32>
    %88 = vector.broadcast %87 : vector<2x1x1xf32> to vector<2x8x2xf32>
    %89 = arith.subf %85, %88 : vector<2x8x2xf32>
    %90 = arith.mulf %89, %89 : vector<2x8x2xf32>
    %cst_48 = arith.constant dense<0.000000e+00> : vector<2x8xf32>
    %91 = vector.multi_reduction <add>, %90, %cst_48 [2] : vector<2x8x2xf32> to vector<2x8xf32>
    %92 = math.sqrt %91 : vector<2x8xf32>
    %cst_49 = arith.constant 0.000000e+00 : f32
    %93 = vector.broadcast %cst_49 : f32 to vector<2x8xf32>
    %94 = arith.subf %93, %92 : vector<2x8xf32>
    %95 = vector.extract_strided_slice %94 {offsets = [0, 0], sizes = [2, 4], strides = [1, 1]} : vector<2x8xf32> to vector<2x4xf32>
    %96 = vector.extract_strided_slice %94 {offsets = [0, 4], sizes = [2, 4], strides = [1, 1]} : vector<2x8xf32> to vector<2x4xf32>
    %97 = arith.subf %96, %95 : vector<2x4xf32>
    %cst_50 = arith.constant 1.000000e+00 : f32
    %98 = vector.broadcast %cst_50 : f32 to vector<2x4xf32>
    %99 = arith.addf %97, %98 : vector<2x4xf32>
    %cst_51 = arith.constant 0.000000e+00 : f32
    %100 = vector.broadcast %cst_51 : f32 to vector<2x4xf32>
    %101 = arith.maximumf %99, %100 : vector<2x4xf32>
    %102 = vector.shape_cast %101 : vector<2x4xf32> to vector<1x2x4xf32>
    %cst_52 = arith.constant dense<0.000000e+00> : vector<1xf32>
    %103 = vector.multi_reduction <add>, %102, %cst_52 [1, 2] : vector<1x2x4xf32> to vector<1xf32>
    %104 = vector.shape_cast %103 : vector<1xf32> to vector<1x1x1xf32>
    %105 = vector.extract %104[0, 0, 0] : f32 from vector<1x1x1xf32>
    %cst_53 = arith.constant 8.000000e+00 : f32
    %106 = arith.divf %105, %cst_53 : f32
    %107 = vector.broadcast %106 : f32 to vector<1x8x128xf32>
    %c0_54 = arith.constant 0 : index
    %c0_55 = arith.constant 0 : index
    %c0_56 = arith.constant 0 : index
    %108 = vector.load %arg16[%c0_54, %c0_55, %c0_56] : memref<1x8x128xf32, #tpu.memory_space<vmem>>, vector<1x8x128xf32>
    tpu.vector_store %arg16[%c0_54, %c0_55, %c0_56], %107 {strides = array<i32>} : memref<1x8x128xf32, #tpu.memory_space<vmem>>, vector<1x8x128xf32>,
    return
  }
  func.func @transform_0(%arg0: i32) -> (i32, i32, i32, i32) {
    %c0_i32 = arith.constant 0 : i32
    %c0_i32_0 = arith.constant 0 : i32
    %c0_i32_1 = arith.constant 0 : i32
    %c0_i32_2 = arith.constant 0 : i32
    return %arg0, %c0_i32, %c0_i32_0, %c0_i32_1 : i32, i32, i32, i32
  }
  func.func @transform_1(%arg0: i32) -> (i32, i32) {
    %c0_i32 = arith.constant 0 : i32
    %c0_i32_0 = arith.constant 0 : i32
    return %arg0, %c0_i32 : i32, i32
  }
  func.func @transform_2(%arg0: i32) -> (i32, i32) {
    %c0_i32 = arith.constant 0 : i32
    %c0_i32_0 = arith.constant 0 : i32
    %c0_i32_1 = arith.constant 0 : i32
    return %c0_i32, %c0_i32_0 : i32, i32
  }
  func.func @transform_3(%arg0: i32) -> (i32, i32) {
    %c0_i32 = arith.constant 0 : i32
    %c0_i32_0 = arith.constant 0 : i32
    %c0_i32_1 = arith.constant 0 : i32
    return %c0_i32, %c0_i32_0 : i32, i32
  }
  func.func @transform_4(%arg0: i32) -> (i32, i32) {
    %c0_i32 = arith.constant 0 : i32
    %c0_i32_0 = arith.constant 0 : i32
    %c0_i32_1 = arith.constant 0 : i32
    return %c0_i32, %c0_i32_0 : i32, i32
  }
  func.func @transform_5(%arg0: i32) -> (i32, i32) {
    %c0_i32 = arith.constant 0 : i32
    %c0_i32_0 = arith.constant 0 : i32
    %c0_i32_1 = arith.constant 0 : i32
    return %c0_i32, %c0_i32_0 : i32, i32
  }
  func.func @transform_6(%arg0: i32) -> (i32, i32) {
    %c0_i32 = arith.constant 0 : i32
    %c0_i32_0 = arith.constant 0 : i32
    %c0_i32_1 = arith.constant 0 : i32
    return %c0_i32, %c0_i32_0 : i32, i32
  }
  func.func @transform_7(%arg0: i32) -> (i32, i32) {
    %c0_i32 = arith.constant 0 : i32
    %c0_i32_0 = arith.constant 0 : i32
    %c0_i32_1 = arith.constant 0 : i32
    return %c0_i32, %c0_i32_0 : i32, i32
  }
  func.func @transform_8(%arg0: i32) -> (i32, i32) {
    %c0_i32 = arith.constant 0 : i32
    %c0_i32_0 = arith.constant 0 : i32
    %c0_i32_1 = arith.constant 0 : i32
    return %c0_i32, %c0_i32_0 : i32, i32
  }
  func.func @transform_9(%arg0: i32) -> (i32, i32) {
    %c0_i32 = arith.constant 0 : i32
    %c0_i32_0 = arith.constant 0 : i32
    %c0_i32_1 = arith.constant 0 : i32
    return %c0_i32, %c0_i32_0 : i32, i32
  }
  func.func @transform_10(%arg0: i32) -> (i32, i32) {
    %c0_i32 = arith.constant 0 : i32
    %c0_i32_0 = arith.constant 0 : i32
    %c0_i32_1 = arith.constant 0 : i32
    return %c0_i32, %c0_i32_0 : i32, i32
  }
  func.func @transform_11(%arg0: i32) -> (i32, i32) {
    %c0_i32 = arith.constant 0 : i32
    %c0_i32_0 = arith.constant 0 : i32
    %c0_i32_1 = arith.constant 0 : i32
    return %c0_i32, %c0_i32_0 : i32, i32
  }
  func.func @transform_12(%arg0: i32) -> (i32, i32) {
    %c0_i32 = arith.constant 0 : i32
    %c0_i32_0 = arith.constant 0 : i32
    %c0_i32_1 = arith.constant 0 : i32
    return %c0_i32, %c0_i32_0 : i32, i32
  }
  func.func @transform_13(%arg0: i32) -> (i32, i32) {
    %c0_i32 = arith.constant 0 : i32
    %c0_i32_0 = arith.constant 0 : i32
    %c0_i32_1 = arith.constant 0 : i32
    return %c0_i32, %c0_i32_0 : i32, i32
  }
  func.func @transform_14(%arg0: i32) -> (i32, i32) {
    %c0_i32 = arith.constant 0 : i32
    %c0_i32_0 = arith.constant 0 : i32
    %c0_i32_1 = arith.constant 0 : i32
    return %c0_i32, %c0_i32_0 : i32, i32
  }
  func.func @transform_15(%arg0: i32) -> (i32, i32, i32) {
    %c0_i32 = arith.constant 0 : i32
    %c0_i32_0 = arith.constant 0 : i32
    %c0_i32_1 = arith.constant 0 : i32
    return %arg0, %c0_i32, %c0_i32_0 : i32, i32, i32
  }
}

</mosaic_0001>

<bundles_post_ra>
// kernel: _hnp_forward.1
= control target key start
LH: loop header
LB: loop body
LE: loop exit
PB: predicated region body
PF: predicated region fallthrough
CT: control target
= control target key end

     0   :  { %s3483_s0 = inlined_call_operand.vmem [shape: bf16[2,8,2,64], index: 0, kind: input, shape index: {}]   ;;  %s3484_s1 = inlined_call_operand.vmem [shape: f32[2,128], index: 1, kind: input, shape index: {}]   ;;  %s3485_s2 = inlined_call_operand.vmem [shape: f32[64,2], index: 2, kind: input, shape index: {}]   ;;  %s3486_s3 = inlined_call_operand.vmem [shape: bf16[64,512], index: 3, kind: input, shape index: {}]   ;;  %s3487_s4 = inlined_call_operand.hbm [shape: f32[1,512], index: 4, kind: input, shape index: {}]   ;;  %s3488_s5 = inlined_call_operand.hbm [shape: bf16[512,256], index: 5, kind: input, shape index: {}]   ;;  %s3489_s6 = inlined_call_operand.hbm [shape: f32[1,256], index: 6, kind: input, shape index: {}]   ;;  %s3490_s7 = inlined_call_operand.vmem [shape: bf16[256,128], index: 7, kind: input, shape index: {}]   ;;  %s3491_s8 = inlined_call_operand.hbm [shape: f32[1,128], index: 8, kind: input, shape index: {}]   ;;  %s3492_s9 = inlined_call_operand.hbm [shape: bf16[128,128], index: 9, kind: input, shape index: {}]   ;;  %s3493_s10 = inlined_call_operand.hbm [shape: f32[1,128], index: 10, kind: input, shape index: {}]   ;;  %s3494_s11 = inlined_call_operand.hbm [shape: bf16[128,256], index: 11, kind: input, shape index: {}]   ;;  %s3495_s12 = inlined_call_operand.hbm [shape: f32[1,256], index: 12, kind: input, shape index: {}]   ;;  %s3496_s13 = inlined_call_operand.hbm [shape: bf16[128,256], index: 13, kind: input, shape index: {}]   ;;  %s3497_s14 = inlined_call_operand.hbm [shape: f32[1,256], index: 14, kind: input, shape index: {}]   ;;  %s3498_s15 = inlined_call_operand.vmem [shape: f32[1,8,128], index: 15, kind: output, shape index: {}]  }
   0x1   :  { %3499 = sst [smem:[#allocation24_spill]] %s3498_s15 }
   0x2   :  { %20 = vsyncpa [#allocation3], 0 }
   0x3   :  { %21 = vsyncpa [#allocation5], 0 }
   0x4   :  { %22 = vsyncpa [#allocation8], 0 }
   0x5   :  { %23 = vsyncpa [#allocation11], 0 }
   0x6   :  { %24 = vsyncpa [#allocation14], 0 }
   0x7   :  { %25 = vsyncpa [#allocation17], 0  ;;  %s2870_s18 = smov [#allocation4]   ;;  %s2638_s22 = scalar_lea.hbm %s3488_s5, 8192 }
   0x8   :  { %s49_s19 = sshll.u32 %s2870_s18, 4  ;;  %p2639_p0 = scmp.ne.s32.totalorder %s3488_s5, %s2638_s22  ;;  %s50_s19 = int_to_ptr.vmem [resolvable:$true] %s49_s19 }
   0x9   :  { %p2642_p1 = scmp.lt.u32.totalorder %s2638_s22, %s3488_s5 }
   0xb   :  { %p2644_p2 = pnand %p2642_p1, %p2639_p0 }
   0xd   :  { %2647 = shalt.err (!%p2644_p2)
}
   0xe   :  { %s2648_s27 = scalar_lea.vmem %s50_s19, 8192  ;;  %p2653_p4 = scmp.lt.s32.totalorder %s50_s19, %s50_s19 }
   0xf   :  { %p2649_p3 = scmp.ne.s32.totalorder %s50_s19, %s2648_s27  ;;  %p2654_p5 = scmp.lt.s32.totalorder %s2648_s27, %s2648_s27 }
  0x11   :  { %p2655_p6 = por %p2654_p5, %p2653_p4 }
  0x13   :  { %p2656_p7 = pnand %p2655_p6, %p2649_p3 }
  0x15   :  { %2659 = shalt.err (!%p2656_p7)
}
  0x16   :  { %s2871_s28 = smov 128   ;;  %s2872_s29 = smov 8  }
  0x17   :  { %55 = dma.hbm_to_vmem [thread:$0]  %s3488_s5, 8192, %s50_s19, [#allocation5], %s2871_s28, %s2871_s28, %s2872_s29  }
  0x18   :  { %s2873_s17 = smov [#allocation7]   ;;  %s2874_s20 = smov [#allocation10]  }
  0x19   :  { %s74_s18 = sshll.u32 %s2873_s17, 4  ;;  %s96_s21 = sshll.u32 %s2874_s20, 4  ;;  %s75_s18 = int_to_ptr.vmem [resolvable:$true] %s74_s18  ;;  %s97_s21 = int_to_ptr.vmem [resolvable:$true] %s96_s21 }
  0x1a   :  { %s2660_s24 = scalar_lea.hbm %s3491_s8, 16 }
  0x1b   :  { %p2661_p8 = scmp.ne.s32.totalorder %s3491_s8, %s2660_s24  ;;  %p2664_p9 = scmp.lt.u32.totalorder %s2660_s24, %s3491_s8 }
  0x1d   :  { %p2666_p10 = pnand %p2664_p9, %p2661_p8 }
  0x1f   :  { %2669 = shalt.err (!%p2666_p10)
}
  0x20   :  { %s2670_s5 = scalar_lea.vmem %s75_s18, 16  ;;  %s2674_s19 = scalar_lea.vmem %s75_s18, 32 }
  0x21   :  { %p2671_p11 = scmp.ne.s32.totalorder %s75_s18, %s2670_s5  ;;  %p2675_p12 = scmp.lt.s32.totalorder %s75_s18, %s75_s18 }
  0x22   :  { %p2676_p13 = scmp.lt.s32.totalorder %s2674_s19, %s2670_s5 }
  0x24   :  { %p2677_p0 = por %p2676_p13, %p2675_p12 }
  0x26   :  { %p2678_p1 = pnand %p2677_p0, %p2671_p11 }
  0x28   :  { %2681 = shalt.err (!%p2678_p1)
}
  0x29   :  { %77 = dma.hbm_to_vmem [thread:$0]  %s3491_s8, 16, %s75_s18, [#allocation8]  }
  0x2a   :  { %s2682_s15 = scalar_lea.hbm %s3493_s10, 16 }
  0x2b   :  { %p2683_p2 = scmp.ne.s32.totalorder %s3493_s10, %s2682_s15  ;;  %p2686_p3 = scmp.lt.u32.totalorder %s2682_s15, %s3493_s10 }
  0x2d   :  { %p2688_p4 = pnand %p2686_p3, %p2683_p2 }
  0x2f   :  { %2691 = shalt.err (!%p2688_p4)
}
  0x30   :  { %s2692_s26 = scalar_lea.vmem %s97_s21, 16  ;;  %s2696_s27 = scalar_lea.vmem %s97_s21, 32 }
  0x31   :  { %p2693_p5 = scmp.ne.s32.totalorder %s97_s21, %s2692_s26  ;;  %p2697_p6 = scmp.lt.s32.totalorder %s97_s21, %s97_s21 }
  0x32   :  { %p2698_p7 = scmp.lt.s32.totalorder %s2696_s27, %s2692_s26 }
  0x34   :  { %p2699_p8 = por %p2698_p7, %p2697_p6 }
  0x36   :  { %p2700_p9 = pnand %p2699_p8, %p2693_p5 }
  0x38   :  { %2703 = shalt.err (!%p2700_p9)
}
  0x39   :  { %99 = dma.hbm_to_vmem [thread:$0]  %s3493_s10, 16, %s97_s21, [#allocation11]  }
  0x3a   :  { %s2875_s5 = smov [#allocation13]   ;;  %s2876_s30 = smov [#allocation2]  }
  0x3b   :  { %s118_s19 = sshll.u32 %s2875_s5, 4  ;;  %s40_s16 = sshll.u32 %s2876_s30, 4  ;;  %s119_s19 = int_to_ptr.vmem [resolvable:$true] %s118_s19  ;;  %s41_s16 = int_to_ptr.vmem [resolvable:$true] %s40_s16 }
  0x3c   :  { %s2704_s15 = scalar_lea.hbm %s3495_s12, 32 }
  0x3d   :  { %p2705_p10 = scmp.ne.s32.totalorder %s3495_s12, %s2704_s15  ;;  %p2708_p11 = scmp.lt.u32.totalorder %s2704_s15, %s3495_s12 }
  0x3f   :  { %p2710_p12 = pnand %p2708_p11, %p2705_p10 }
  0x41   :  { %2713 = shalt.err (!%p2710_p12)
}
  0x42   :  { %s2714_s10 = scalar_lea.vmem %s119_s19, 32  ;;  %p2719_p0 = scmp.lt.s32.totalorder %s119_s19, %s119_s19 }
  0x43   :  { %p2715_p13 = scmp.ne.s32.totalorder %s119_s19, %s2714_s10  ;;  %p2720_p1 = scmp.lt.s32.totalorder %s2714_s10, %s2714_s10 }
  0x45   :  { %p2721_p2 = por %p2720_p1, %p2719_p0 }
  0x47   :  { %p2722_p3 = pnand %p2721_p2, %p2715_p13 }
  0x49   :  { %2725 = shalt.err (!%p2722_p3)
}
  0x4a   :  { %121 = dma.hbm_to_vmem [thread:$0]  %s3495_s12, 32, %s119_s19, [#allocation14]  }
  0x4b   :  { %s2726_s18 = scalar_lea.hbm %s3487_s4, 64 }
  0x4c   :  { %p2727_p4 = scmp.ne.s32.totalorder %s3487_s4, %s2726_s18  ;;  %p2730_p5 = scmp.lt.u32.totalorder %s2726_s18, %s3487_s4 }
  0x4e   :  { %p2732_p6 = pnand %p2730_p5, %p2727_p4 }
  0x50   :  { %2735 = shalt.err (!%p2732_p6)
}
  0x51   :  { %s2736_s15 = scalar_lea.vmem %s41_s16, 64  ;;  %p2741_p8 = scmp.lt.s32.totalorder %s41_s16, %s41_s16 }
  0x52   :  { %p2737_p7 = scmp.ne.s32.totalorder %s41_s16, %s2736_s15  ;;  %p2742_p9 = scmp.lt.s32.totalorder %s2736_s15, %s2736_s15 }
  0x54   :  { %p2743_p10 = por %p2742_p9, %p2741_p8 }
  0x56   :  { %p2744_p11 = pnand %p2743_p10, %p2737_p7 }
  0x58   :  { %2747 = shalt.err (!%p2744_p11)
}
  0x59   :  { %43 = dma.hbm_to_vmem [thread:$0]  %s3487_s4, 64, %s41_s16, [#allocation3]  }
  0x5a   :  { %s2877_s22 = smov [#allocation6]   ;;  %s2878_s24 = smov [#allocation9]  }
  0x5b   :  { %s62_s23 = sshll.u32 %s2877_s22, 4  ;;  %s83_s25 = sshll.u32 %s2878_s24, 4  ;;  %s63_s23 = int_to_ptr.vmem [resolvable:$true] %s62_s23  ;;  %s84_s25 = int_to_ptr.vmem [resolvable:$true] %s83_s25 }
  0x5c   :  { %s2748_s26 = scalar_lea.hbm %s3489_s6, 32 }
  0x5d   :  { %p2749_p12 = scmp.ne.s32.totalorder %s3489_s6, %s2748_s26  ;;  %p2752_p13 = scmp.lt.u32.totalorder %s2748_s26, %s3489_s6 }
  0x5f   :  { %p2754_p0 = pnand %p2752_p13, %p2749_p12 }
  0x61   :  { %2757 = shalt.err (!%p2754_p0)
}
  0x62   :  { %s2758_s4 = scalar_lea.vmem %s63_s23, 32  ;;  %p2763_p2 = scmp.lt.s32.totalorder %s63_s23, %s63_s23 }
  0x63   :  { %p2759_p1 = scmp.ne.s32.totalorder %s63_s23, %s2758_s4  ;;  %p2764_p3 = scmp.lt.s32.totalorder %s2758_s4, %s2758_s4 }
  0x65   :  { %p2765_p4 = por %p2764_p3, %p2763_p2 }
  0x67   :  { %p2766_p5 = pnand %p2765_p4, %p2759_p1 }
  0x69   :  { %2769 = shalt.err (!%p2766_p5)
}
  0x6a   :  { %65 = dma.hbm_to_vmem [thread:$0]  %s3489_s6, 32, %s63_s23, [#allocation5]  }
  0x6b   :  { %s2770_s15 = scalar_lea.hbm %s3492_s9, 1024 }
  0x6c   :  { %p2771_p6 = scmp.ne.s32.totalorder %s3492_s9, %s2770_s15  ;;  %p2774_p7 = scmp.lt.u32.totalorder %s2770_s15, %s3492_s9 }
  0x6e   :  { %p2776_p8 = pnand %p2774_p7, %p2771_p6 }
  0x70   :  { %2779 = shalt.err (!%p2776_p8)
}
  0x71   :  { %s2780_s10 = scalar_lea.vmem %s84_s25, 1024  ;;  %p2785_p10 = scmp.lt.s32.totalorder %s84_s25, %s84_s25 }
  0x72   :  { %p2781_p9 = scmp.ne.s32.totalorder %s84_s25, %s2780_s10  ;;  %p2786_p11 = scmp.lt.s32.totalorder %s2780_s10, %s2780_s10 }
  0x74   :  { %p2787_p12 = por %p2786_p11, %p2785_p10 }
  0x76   :  { %p2788_p13 = pnand %p2787_p12, %p2781_p9 }
  0x78   :  { %2791 = shalt.err (!%p2788_p13)
}
  0x79   :  { %s2879_s6 = smov 64   ;;  %s2880_s23 = smov 4  }
  0x7a   :  { %89 = dma.hbm_to_vmem [thread:$0]  %s3492_s9, 1024, %s84_s25, [#allocation8], %s2879_s6, %s2879_s6, %s2880_s23  }
  0x7b   :  { %s2881_s27 = smov [#allocation12]   ;;  %s2882_s18 = smov [#allocation15]  }
  0x7c   :  { %s105_s8 = sshll.u32 %s2881_s27, 4  ;;  %s127_s5 = sshll.u32 %s2882_s18, 4  ;;  %s106_s8 = int_to_ptr.vmem [resolvable:$true] %s105_s8  ;;  %s128_s5 = int_to_ptr.vmem [resolvable:$true] %s127_s5 }
  0x7d   :  { %s2792_s30 = scalar_lea.hbm %s3494_s11, 2048 }
  0x7e   :  { %p2793_p0 = scmp.ne.s32.totalorder %s3494_s11, %s2792_s30  ;;  %p2796_p1 = scmp.lt.u32.totalorder %s2792_s30, %s3494_s11 }
  0x80   :  { %p2798_p2 = pnand %p2796_p1, %p2793_p0 }
  0x82   :  { %2801 = shalt.err (!%p2798_p2)
}
  0x83   :  { %s2802_s9 = scalar_lea.vmem %s106_s8, 2048  ;;  %p2807_p4 = scmp.lt.s32.totalorder %s106_s8, %s106_s8 }
  0x84   :  { %p2803_p3 = scmp.ne.s32.totalorder %s106_s8, %s2802_s9  ;;  %p2808_p5 = scmp.lt.s32.totalorder %s2802_s9, %s2802_s9 }
  0x86   :  { %p2809_p6 = por %p2808_p5, %p2807_p4 }
  0x88   :  { %p2810_p7 = pnand %p2809_p6, %p2803_p3 }
  0x8a   :  { %2813 = shalt.err (!%p2810_p7)
}
  0x8b   :  { %111 = dma.hbm_to_vmem [thread:$0]  %s3494_s11, 2048, %s106_s8, [#allocation11], %s2871_s28, %s2871_s28, %s2872_s29  }
  0x8c   :  { %s2814_s10 = scalar_lea.hbm %s3496_s13, 2048 }
  0x8d   :  { %p2815_p8 = scmp.ne.s32.totalorder %s3496_s13, %s2814_s10  ;;  %p2818_p9 = scmp.lt.u32.totalorder %s2814_s10, %s3496_s13 }
  0x8f   :  { %p2820_p10 = pnand %p2818_p9, %p2815_p8 }
  0x91   :  { %2823 = shalt.err (!%p2820_p10)
}
  0x92   :  { %s2824_s27 = scalar_lea.vmem %s128_s5, 2048  ;;  %p2829_p12 = scmp.lt.s32.totalorder %s128_s5, %s128_s5 }
  0x93   :  { %p2825_p11 = scmp.ne.s32.totalorder %s128_s5, %s2824_s27  ;;  %p2830_p13 = scmp.lt.s32.totalorder %s2824_s27, %s2824_s27 }
  0x95   :  { %p2831_p0 = por %p2830_p13, %p2829_p12 }
  0x97   :  { %p2832_p1 = pnand %p2831_p0, %p2825_p11 }
  0x99   :  { %2835 = shalt.err (!%p2832_p1)
}
  0x9a   :  { %133 = dma.hbm_to_vmem [thread:$0]  %s3496_s13, 2048, %s128_s5, [#allocation14], %s2871_s28, %s2871_s28, %s2872_s29  }
  0x9b   :  { %s2883_s18 = smov [#allocation16]   ;;  %s2836_s17 = scalar_lea.hbm %s3497_s14, 32 }
  0x9c   :  { %s140_s4 = sshll.u32 %s2883_s18, 4  ;;  %p2837_p2 = scmp.ne.s32.totalorder %s3497_s14, %s2836_s17  ;;  %s141_s4 = int_to_ptr.vmem [resolvable:$true] %s140_s4 }
  0x9d   :  { %p2840_p3 = scmp.lt.u32.totalorder %s2836_s17, %s3497_s14 }
  0x9f   :  { %p2842_p4 = pnand %p2840_p3, %p2837_p2 }
  0xa1   :  { %2845 = shalt.err (!%p2842_p4)
}
  0xa2   :  { %s2846_s25 = scalar_lea.vmem %s141_s4, 32  ;;  %p2851_p6 = scmp.lt.s32.totalorder %s141_s4, %s141_s4 }
  0xa3   :  { %p2847_p5 = scmp.ne.s32.totalorder %s141_s4, %s2846_s25  ;;  %p2852_p7 = scmp.lt.s32.totalorder %s2846_s25, %s2846_s25 }
  0xa5   :  { %p2853_p8 = por %p2852_p7, %p2851_p6 }
  0xa7   :  { %p2854_p9 = pnand %p2853_p8, %p2847_p5 }
  0xa9   :  { %2857 = shalt.err (!%p2854_p9)
}
  0xaa   :  { %143 = dma.hbm_to_vmem [thread:$0]  %s3497_s14, 32, %s141_s4, [#allocation17]  }
  0xab   :  { %2858 = dma.done.wait [#allocation3], 64  }
  0xac   :  { %2859 = vsyncadd [#allocation3], 4294967232 }
  0xad   :  { %2860 = dma.done.wait [#allocation5], 8224  }
  0xae   :  { %2861 = vsyncadd [#allocation5], 4294959072 }
  0xaf   :  { %2862 = dma.done.wait [#allocation8], 1040  }
  0xb0   :  { %2863 = vsyncadd [#allocation8], 4294966256 }
  0xb1   :  { %2864 = dma.done.wait [#allocation11], 2064  }
  0xb2   :  { %2865 = vsyncadd [#allocation11], 4294965232 }
  0xb3   :  { %2866 = dma.done.wait [#allocation14], 2080  }
  0xb4   :  { %2867 = vsyncadd [#allocation14], 4294965216 }
  0xb5   :  { %2868 = dma.done.wait [#allocation17], 32  }
  0xb6   :  { %2869 = vsyncadd [#allocation17], 4294967264  ;;  %v2884_v0 = vmov 0   ;;  %v303_v1 = vlaneseq  ;;  %v2434_v2 = vld [vmem:[%s3486_s3 + $0x4] ss:$16 sps:$4 sm:$0xff]   ;;  %vm367_vm0 = vcmask 1041409  }
  0xb7   :  { %572 = vmatprep.mubr.bf16.mxu0 %v2884_v0  ;;  %613 = vmatprep.mubr.bf16.mxu1 %v2884_v0  ;;  %v2436_v4 = vld [vmem:[%s3486_s3] ss:$16 sps:$4 sm:$0xff]   ;;  %v2437_v5 = vld [vmem:[%s3486_s3 + $0x24] ss:$16 sps:$4 sm:$0xff]   ;;  %v183_v21 = vld [vmem:[%s3483_s0 + $0x8] sm:$0x1] }
  0xb8   :  { %2432 = vset.pattern.permute.xlu0 %v2884_v0  ;;  %2433 = vset.pattern.permute.xlu1 %v2884_v0  ;;  %v3106_v3 = vshrl.u32 %v303_v1, 7  ;;  %v2439_v6 = vld [vmem:[%s3486_s3 + $0x20] ss:$16 sps:$4 sm:$0xff]   ;;  %v2440_v7 = vld [vmem:[%s3486_s3 + $0x44] ss:$16 sps:$4 sm:$0xff]   ;;  %v199_v31 = vunpack.c.l.bf16 %v183_v21  ;;  %vm369_vm1 = vcmask 1042434  }
  0xb9   :  { %540 = vmatprep.subr.bf16.mxu0 %v2434_v2  ;;  %v2442_v9 = vld [vmem:[%s3486_s3 + $0x40] ss:$16 sps:$4 sm:$0xff]   ;;  %v2443_v12 = vld [vmem:[%s3486_s3 + $0x64] ss:$16 sps:$4 sm:$0xff]   ;;  %v184_v22 = vld [vmem:[%s3483_s0 + $0x9] sm:$0x1] }
  0xba   :  { %541 = vmatpush1.bf16.msra.mxu0 %v2436_v4  ;;  %v3121_v8 = vsub.s32 0, %v3106_v3  ;;  %v175_v10 = vld [vmem:[%s3483_s0] sm:$0x1]  ;;  %v176_v11 = vld [vmem:[%s3483_s0 + $0x1] sm:$0x1]  ;;  %v200_v32 = vunpack.c.l.bf16 %v184_v22  ;;  %v2158_v51 = vrot.slane %v199_v31, 9 }
  0xbb   :  { %542 = vmatprep.subr.bf16.mxu0 %v2437_v5  ;;  %v3138_v13 = vld [vmem:[%s3483_s0 + $0x2] sm:$0x1]  ;;  %v3143_v14 = vld [vmem:[%s3483_s0 + $0x3] sm:$0x1]  ;;  %v3148_v15 = vld [vmem:[%s3483_s0 + $0x4] sm:$0x1]  ;;  %v191_v19 = vunpack.c.l.bf16 %v175_v10  ;;  %v192_v20 = vunpack.c.l.bf16 %v176_v11 }
  0xbc   :  { %v3153_v16 = vld [vmem:[%s3483_s0 + $0x5] sm:$0x1]  ;;  %v3158_v17 = vld [vmem:[%s3483_s0 + $0x6] sm:$0x1]  ;;  %v3163_v18 = vld [vmem:[%s3483_s0 + $0x7] sm:$0x1]  ;;  %v193_v24 = vunpack.c.l.bf16 %v3138_v13  ;;  %v194_v25 = vunpack.c.l.bf16 %v3143_v14  ;;  %v195_v30 = vunpack.c.l.bf16 %v3148_v15 }
  0xbd   :  { %v185_v23 = vld [vmem:[%s3483_s0 + $0xa] sm:$0x1]  ;;  %v2445_v26 = vld [vmem:[%s3486_s3 + $0x60] ss:$16 sps:$4 sm:$0xff]   ;;  %v186_v27 = vld [vmem:[%s3483_s0 + $0xb] sm:$0x1]  ;;  %v196_v36 = vunpack.c.l.bf16 %v3153_v16  ;;  %v197_v37 = vunpack.c.l.bf16 %v3158_v17  ;;  %v198_v40 = vunpack.c.l.bf16 %v3163_v18 }
  0xbe   :  { %543 = vmatpush1.bf16.msra.mxu0 %v2439_v6  ;;  %v187_v28 = vld [vmem:[%s3483_s0 + $0xc] sm:$0x1]  ;;  %v3188_v29 = vld [vmem:[%s3483_s0 + $0xd] sm:$0x1]  ;;  %v201_v33 = vunpack.c.l.bf16 %v185_v23  ;;  %v3194_v34 = vld [vmem:[%s3483_s0 + $0xe] sm:$0x1]  ;;  %v202_v38 = vunpack.c.l.bf16 %v186_v27 }
  0xbf   :  { %544 = vmatprep.subr.bf16.mxu0 %v2440_v7  ;;  %v3199_v35 = vld [vmem:[%s3483_s0 + $0xf] sm:$0x1]  ;;  %v203_v39 = vunpack.c.l.bf16 %v187_v28  ;;  %v204_v41 = vunpack.c.l.bf16 %v3188_v29  ;;  %v2150_v42 = vrot.slane %v191_v19, 9  ;;  %v2151_v43 = vrot.slane %v192_v20, 9  ;;  %v2448_v49 = vld [vmem:[%s3486_s3 + $0x8] ss:$16 sps:$4 sm:$0xff]  }
  0xc0   :  { %v2446_v44 = vld [vmem:[%s3486_s3 + $0xc] ss:$16 sps:$4 sm:$0xff]   ;;  %v205_v45 = vunpack.c.l.bf16 %v3194_v34  ;;  %v206_v46 = vunpack.c.l.bf16 %v3199_v35  ;;  %v2152_v47 = vrot.slane %v193_v24, 9  ;;  %v2153_v48 = vrot.slane %v194_v25, 9  ;;  %v2451_v62 = vld [vmem:[%s3486_s3 + $0x28] ss:$16 sps:$4 sm:$0xff]  }
  0xc1   :  { %v2154_v50 = vrot.slane %v195_v30, 9  ;;  %v2159_v52 = vrot.slane %v200_v32, 9  ;;  %v2160_v53 = vrot.slane %v201_v33, 9  ;;  %581 = vmatprep.subr.bf16.mxu1 %v2446_v44  ;;  %v2155_v54 = vrot.slane %v196_v36, 9  ;;  %v2449_v58 = vld [vmem:[%s3486_s3 + $0x2c] ss:$16 sps:$4 sm:$0xff]  }
  0xc2   :  { %545 = vmatpush1.bf16.msra.mxu0 %v2442_v9  ;;  %v2156_v55 = vrot.slane %v197_v37, 9  ;;  %v2161_v56 = vrot.slane %v202_v38, 9  ;;  %v2162_v57 = vrot.slane %v203_v39, 9  ;;  %vm371_vm2 = vcmask 1043459   ;;  %582 = vmatpush1.bf16.msra.mxu1 %v2448_v49  ;;  %v2452_v63 = vld [vmem:[%s3486_s3 + $0x4c] ss:$16 sps:$4 sm:$0xff]  }
  0xc3   :  { %546 = vmatprep.subr.bf16.mxu0 %v2443_v12  ;;  %v2163_v59 = vrot.slane %v204_v41, 9  ;;  %v3216_v60 = vsub.f32 %v191_v19, %v2150_v42  ;;  %v3218_v61 = vsub.f32 %v192_v20, %v2151_v43  ;;  %vm373_vm3 = vcmask 1044484   ;;  %583 = vmatprep.subr.bf16.mxu1 %v2449_v58  ;;  %v2454_v16 = vld [vmem:[%s3486_s3 + $0x48] ss:$16 sps:$4 sm:$0xff]   ;;  %v2455_v22 = vld [vmem:[%s3486_s3 + $0x6c] ss:$16 sps:$4 sm:$0xff]  }
  0xc4   :  { %v2157_v2 = vrot.slane %v198_v40, 9  ;;  %v2164_v4 = vrot.slane %v205_v45, 9  ;;  %v2165_v5 = vrot.slane %v206_v46, 9  ;;  %v3226_v6 = vsub.f32 %v193_v24, %v2152_v47  ;;  %v2460_v17 = vld [vmem:[#allocation4 + $0x4] ss:$8 sps:$4 sm:$0xff]   ;;  %s3500_s10 = sld [smem:[#allocation24_spill]] }
  0xc5   :  { %vm375_vm4 = vcmask 1045509   ;;  %v3228_v7 = vsub.f32 %v194_v25, %v2153_v48  ;;  %v3230_v9 = vsub.f32 %v199_v31, %v2158_v51  ;;  %v3232_v10 = vsub.f32 %v200_v32, %v2159_v52  ;;  %v2457_v34 = vld [vmem:[%s3486_s3 + $0x68] ss:$16 sps:$4 sm:$0xff]  }
  0xc6   :  { %547 = vmatpush1.bf16.msra.mxu0 %v2445_v26  ;;  %v3234_v11 = vsub.f32 %v201_v33, %v2160_v53  ;;  %v3236_v12 = vsub.f32 %v195_v30, %v2154_v50  ;;  %v3238_v13 = vsub.f32 %v196_v36, %v2155_v54  ;;  %v3240_v14 = vsub.f32 %v202_v38, %v2161_v56 }
  0xc7   :  { %v3242_v15 = vsub.f32 %v203_v39, %v2162_v57  ;;  %584 = vmatpush1.bf16.msra.mxu1 %v2451_v62  ;;  %v3247_v18 = vsub.f32 %v197_v37, %v2156_v55  ;;  %v3249_v19 = vsub.f32 %v204_v41, %v2163_v59  ;;  %v306_v20 = vrot.slane %v3216_v60, %v3121_v8 }
  0xc8   :  { %v310_v21 = vrot.slane %v3218_v61, %v3121_v8  ;;  %585 = vmatprep.subr.bf16.mxu1 %v2452_v63  ;;  %v3258_v23 = vsub.f32 %v198_v40, %v2157_v2  ;;  %v3260_v24 = vsub.f32 %v205_v45, %v2164_v4  ;;  %v3262_v25 = vsub.f32 %v206_v46, %v2165_v5 }
  0xc9   :  { %v314_v26 = vrot.slane %v3226_v6, %v3121_v8  ;;  %1034 = vmatprep.subr.bf16.mxu0 %v2460_v17  ;;  %v318_v27 = vrot.slane %v3228_v7, %v3121_v8  ;;  %v338_v28 = vrot.slane %v3230_v9, %v3121_v8  ;;  %v342_v29 = vrot.slane %v3232_v10, %v3121_v8 }
  0xca   :  { %v346_v30 = vrot.slane %v3234_v11, %v3121_v8  ;;  %v322_v31 = vrot.slane %v3236_v12, %v3121_v8  ;;  %v350_v32 = vrot.slane %v3240_v14, %v3121_v8  ;;  %v354_v33 = vrot.slane %v3242_v15, %v3121_v8 }
  0xcb   :  { %vm377_vm5 = vcmask 1046534   ;;  %586 = vmatpush1.bf16.msra.mxu1 %v2454_v16  ;;  %v326_v35 = vrot.slane %v3238_v13, %v3121_v8  ;;  %v358_v36 = vrot.slane %v3249_v19, %v3121_v8  ;;  %v368_v37 = vsel %vm367_vm0, %v310_v21, %v306_v20 }
  0xcc   :  { %v381_v38 = vsel %vm367_vm0, %v342_v29, %v338_v28  ;;  %587 = vmatprep.subr.bf16.mxu1 %v2455_v22  ;;  %v330_v39 = vrot.slane %v3247_v18, %v3121_v8  ;;  %v362_v40 = vrot.slane %v3260_v24, %v3121_v8  ;;  %v370_v41 = vsel %vm369_vm1, %v314_v26, %v368_v37 }
  0xcd   :  { %v382_v42 = vsel %vm369_vm1, %v346_v30, %v381_v38  ;;  %v334_v43 = vrot.slane %v3258_v23, %v3121_v8  ;;  %v366_v44 = vrot.slane %v3262_v25, %v3121_v8  ;;  %v372_v45 = vsel %vm371_vm2, %v318_v27, %v370_v41  ;;  %v2461_v38 = vld [vmem:[#allocation4 + $0x10] ss:$8 sps:$4 sm:$0xff]   ;;  %v2469_v41 = vld [vmem:[#allocation4 + $0x34] ss:$8 sps:$4 sm:$0xff]  }
  0xce   :  { %v383_v46 = vsel %vm371_vm2, %v350_v32, %v382_v42  ;;  %v374_v47 = vsel %vm373_vm3, %v322_v31, %v372_v45  ;;  %vm379_vm6 = vcmask 1047559   ;;  %vm390_vm7 = vcmask 523264   ;;  %v2467_v42 = vld [vmem:[#allocation4 + $0x30] ss:$8 sps:$4 sm:$0xff]   ;;  %v2475_v45 = vld [vmem:[#allocation4 + $0x54] ss:$8 sps:$4 sm:$0xff]  }
  0xcf   :  { %v384_v48 = vsel %vm373_vm3, %v354_v33, %v383_v46  ;;  %588 = vmatpush1.bf16.msra.mxu1 %v2457_v34  ;;  %v376_v49 = vsel %vm375_vm4, %v326_v35, %v374_v47  ;;  %v2458_v34 = vld [vmem:[#allocation4] ss:$8 sps:$4 sm:$0xff]   ;;  %v2463_v35 = vld [vmem:[#allocation4 + $0x14] ss:$8 sps:$4 sm:$0xff]   ;;  %v2473_v46 = vld [vmem:[#allocation4 + $0x50] ss:$8 sps:$4 sm:$0xff]  }
  0xd0   :  { %v385_v50 = vsel %vm375_vm4, %v358_v36, %v384_v48  ;;  %v378_v51 = vsel %vm377_vm5, %v330_v39, %v376_v49  ;;  %v2466_v39 = vld [vmem:[#allocation4 + $0x24] ss:$8 sps:$4 sm:$0xff]   ;;  %v2476_v48 = vld [vmem:[#allocation4 + $0x60] ss:$8 sps:$4 sm:$0xff]   ;;  %v2481_v49 = vld [vmem:[#allocation4 + $0x74] ss:$8 sps:$4 sm:$0xff]  }
  0xd1   :  { %v386_v52 = vsel %vm377_vm5, %v362_v40, %v385_v50  ;;  %v380_v53 = vsel %vm379_vm6, %v334_v43, %v378_v51  ;;  %v2464_v40 = vld [vmem:[#allocation4 + $0x20] ss:$8 sps:$4 sm:$0xff]   ;;  %v2472_v43 = vld [vmem:[#allocation4 + $0x44] ss:$8 sps:$4 sm:$0xff]   ;;  %v2479_v50 = vld [vmem:[#allocation4 + $0x70] ss:$8 sps:$4 sm:$0xff]  }
  0xd2   :  { %v387_v54 = vsel %vm379_vm6, %v366_v44, %v386_v52  ;;  %v391_v55 = vsel %vm390_vm7, %v380_v53, 0.0  ;;  %v2470_v44 = vld [vmem:[#allocation4 + $0x40] ss:$8 sps:$4 sm:$0xff]   ;;  %v2478_v47 = vld [vmem:[#allocation4 + $0x64] ss:$8 sps:$4 sm:$0xff]   ;;  %vm2886_vm14 = vmmov 0  }
  0xd3   :  { %v398_v56 = vsel %vm390_vm7, %v387_v54, 0.0  ;;  %v392_v57 = vrot.slane %v391_v55, 4  ;;  %v2484_v51 = vld [vmem:[#allocation4 + $0x84] ss:$8 sps:$4 sm:$0xff]   ;;  %v2482_v52 = vld [vmem:[#allocation4 + $0x80] ss:$8 sps:$4 sm:$0xff]  }
  0xd4   :  { %v399_v58 = vrot.slane %v398_v56, 4  ;;  %v2487_v53 = vld [vmem:[#allocation4 + $0x94] ss:$8 sps:$4 sm:$0xff]   ;;  %v2485_v54 = vld [vmem:[#allocation4 + $0x90] ss:$8 sps:$4 sm:$0xff]  }
  0xd5   :  { %v393_v59 = vadd.f32 %v392_v57, %v391_v55  ;;  %v2490_v55 = vld [vmem:[#allocation4 + $0xa4] ss:$8 sps:$4 sm:$0xff]   ;;  %v2493_v57 = vld [vmem:[#allocation4 + $0xb4] ss:$8 sps:$4 sm:$0xff]  }
  0xd6   :  { %v400_v62 = vadd.f32 %v399_v58, %v398_v56  ;;  %v2488_v56 = vld [vmem:[#allocation4 + $0xa0] ss:$8 sps:$4 sm:$0xff]   ;;  %v2491_v58 = vld [vmem:[#allocation4 + $0xb0] ss:$8 sps:$4 sm:$0xff]  }
  0xd7   :  { %v394_v63 = vrot.slane %v393_v59, 2 }
  0xd8   :  { %v401_v2 = vrot.slane %v400_v62, 2 }
  0xd9   :  { %v395_v4 = vadd.f32 %v394_v63, %v393_v59  ;;  %v2496_v59 = vld [vmem:[#allocation4 + $0xc4] ss:$8 sps:$4 sm:$0xff]   ;;  %v2499_v63 = vld [vmem:[#allocation4 + $0xd4] ss:$8 sps:$4 sm:$0xff]  }
  0xda   :  { %v402_v5 = vadd.f32 %v401_v2, %v400_v62  ;;  %v2494_v62 = vld [vmem:[#allocation4 + $0xc0] ss:$8 sps:$4 sm:$0xff]   ;;  %v2497_v2 = vld [vmem:[#allocation4 + $0xd0] ss:$8 sps:$4 sm:$0xff]  }
  0xdb   :  { %v396_v16 = vrot.slane %v395_v4, 1 }
  0xdc   :  { %v403_v17 = vrot.slane %v402_v5, 1 }
  0xdd   :  { %v397_v20 = vadd.f32 %v396_v16, %v395_v4  ;;  %v2502_v4 = vld [vmem:[#allocation4 + $0xe4] ss:$8 sps:$4 sm:$0xff]   ;;  %v2505_v16 = vld [vmem:[#allocation4 + $0xf4] ss:$8 sps:$4 sm:$0xff]  }
  0xde   :  { %v404_v21 = vadd.f32 %v403_v17, %v402_v5  ;;  %v2500_v5 = vld [vmem:[#allocation4 + $0xe0] ss:$8 sps:$4 sm:$0xff]   ;;  %v2503_v17 = vld [vmem:[#allocation4 + $0xf0] ss:$8 sps:$4 sm:$0xff]  }
  0xdf   :  { %v406_v22 = vmul.f32 0.125, %v397_v20  ;;  %v2508_v20 = vld [vmem:[#allocation4 + $0x104] ss:$8 sps:$4 sm:$0xff]  }
  0xe0   :  { %v407_v26 = vmul.f32 0.125, %v404_v21  ;;  %v2554_v21 = vld [vmem:[%s3490_s7 + $0x40] sm:$0xff]  }
  0xe1   :  { %v3311_v27 = vsub.f32 0.0, %v406_v22  ;;  %v2555_v22 = vld [vmem:[%s3490_s7] sm:$0xff]   ;;  %2309 = vmatprep.subr.bf16.mxu1 %v2554_v21 }
  0xe2   :  { %v3313_v28 = vsub.f32 0.0, %v407_v26  ;;  %v2556_v26 = vld [vmem:[%s3490_s7 + $0x48] sm:$0xff]  }
  0xe3   :  { %v410_v29 = vpack.c.bf16 %v3311_v27, %v3311_v27  ;;  %v2512_v21 = vld [vmem:[#allocation4 + $0x120] ss:$8 sps:$4 sm:$0xff]  }
  0xe4   :  { %v411_v30 = vpack.c.bf16 %v3313_v28, %v3313_v28 }
  0xe5   :  { %v452_v31 = vunpack.c.l.b16 %v410_v29  ;;  %v2557_v29 = vld [vmem:[%s3490_s7 + $0x8] sm:$0xff]  }
  0xe6   :  { %v453_v32 = vunpack.c.l.b16 %v411_v30  ;;  %v2558_v30 = vld [vmem:[%s3490_s7 + $0x50] sm:$0xff]  }
  0xe8   :  { %v454_v33 = vrot.slane %v453_v32, 7  ;;  %v2560_v32 = vld [vmem:[%s3490_s7 + $0x58] sm:$0xff]  }
  0xea   :  { %v455_v36 = vsel %vm367_vm0, %v454_v33, %v452_v31  ;;  %v2559_v31 = vld [vmem:[%s3490_s7 + $0x10] sm:$0xff]   ;;  %v2561_v33 = vld [vmem:[%s3490_s7 + $0x18] sm:$0xff]  }
  0xeb   :  { %v456_v37 = vpack.c.b16 %v455_v36, %v455_v36  ;;  %v2564_v36 = vld [vmem:[%s3490_s7 + $0x68] sm:$0xff]  }
  0xed   :  { %2182 = vmatmul.mubr.msk.bf16.vlgmr.msra.gmra.mrb[0].mxu0 %vm390_vm7, %v456_v37  ;;  %2183 = vmatmul.mubr.msk.bf16.vlgmr.msra.gmra.mrb[0].mxu1 %vm390_vm7, %v456_v37  ;;  %v2565_v37 = vld [vmem:[%s3490_s7 + $0x28] sm:$0xff]  }
  0xee   :  { %1035 = vmatpush1.bf16.msra.mxu0 %v2458_v34  ;;  %2310 = vmatpush3.bf16.msra.mxu1 %v2555_v22  ;;  %v2562_v34 = vld [vmem:[%s3490_s7 + $0x60] sm:$0xff]  }
  0xef   :  { %1036 = vmatprep.subr.bf16.mxu0 %v2463_v35  ;;  %2311 = vmatprep.subr.bf16.mxu1 %v2556_v26  ;;  %v2563_v35 = vld [vmem:[%s3490_s7 + $0x20] sm:$0xff]   ;;  %v2515_v26 = vld [vmem:[#allocation4 + $0x130] ss:$8 sps:$4 sm:$0xff]  }
  0xf0   :  { %v2517_v22 = vld [vmem:[#allocation4 + $0x134] ss:$8 sps:$4 sm:$0xff]  }
  0xf2   :  { %1037 = vmatpush1.bf16.msra.mxu0 %v2461_v38  ;;  %2312 = vmatpush3.bf16.msra.mxu1 %v2557_v29  ;;  %v3358_v38 = vld [vmem:[#allocation2] sm:$0xf]  ;;  %v2520_v29 = vld [vmem:[#allocation4 + $0x144] ss:$8 sps:$4 sm:$0xff]  }
  0xf3   :  { %1038 = vmatprep.subr.bf16.mxu0 %v2466_v39  ;;  %2313 = vmatprep.subr.bf16.mxu1 %v2558_v30  ;;  %v3361_v39 = vsub.s32 1, %v3106_v3  ;;  %v2518_v30 = vld [vmem:[#allocation4 + $0x140] ss:$8 sps:$4 sm:$0xff]  }
  0xf6   :  { %1039 = vmatpush1.bf16.msra.mxu0 %v2464_v40  ;;  %2314 = vmatpush3.bf16.msra.mxu1 %v2559_v31  ;;  %v444_v40 = vsub.s32 3, %v3106_v3  ;;  %v2523_v31 = vld [vmem:[#allocation4 + $0x154] ss:$8 sps:$4 sm:$0xff]  }
  0xf7   :  { %1040 = vmatprep.subr.bf16.mxu0 %v2469_v41  ;;  %2315 = vmatprep.subr.bf16.mxu1 %v2560_v32  ;;  %v433_v41 = vrot.slane %v3358_v38, %v3121_v8  ;;  %v2521_v32 = vld [vmem:[#allocation4 + $0x150] ss:$8 sps:$4 sm:$0xff]  }
  0xfa   :  { %1041 = vmatpush1.bf16.msra.mxu0 %v2467_v42  ;;  %2316 = vmatpush3.bf16.msra.mxu1 %v2561_v33  ;;  %v437_v42 = vrot.slane %v3358_v38, %v3361_v39  ;;  %v2526_v33 = vld [vmem:[#allocation4 + $0x164] ss:$8 sps:$4 sm:$0xff]  }
  0xfb   :  { %1042 = vmatprep.subr.bf16.mxu0 %v2472_v43  ;;  %2317 = vmatprep.subr.bf16.mxu1 %v2562_v34  ;;  %v445_v43 = vrot.slane %v3358_v38, %v444_v40  ;;  %v2524_v34 = vld [vmem:[#allocation4 + $0x160] ss:$8 sps:$4 sm:$0xff]  }
  0xfc   :  { %v2530_v40 = vld [vmem:[#allocation4 + $0x180] ss:$8 sps:$4 sm:$0xff]  }
  0xfe   :  { %1043 = vmatpush1.bf16.msra.mxu0 %v2470_v44  ;;  %2318 = vmatpush3.bf16.msra.mxu1 %v2563_v35  ;;  %v2529_v35 = vld [vmem:[#allocation4 + $0x174] ss:$8 sps:$4 sm:$0xff]  }
  0xff   :  { %1044 = vmatprep.subr.bf16.mxu0 %v2475_v45  ;;  %2319 = vmatprep.subr.bf16.mxu1 %v2564_v36  ;;  %v2527_v36 = vld [vmem:[#allocation4 + $0x170] ss:$8 sps:$4 sm:$0xff]  }
 0x102   :  { %1045 = vmatpush1.bf16.msra.mxu0 %v2473_v46  ;;  %2320 = vmatpush3.bf16.msra.mxu1 %v2565_v37  ;;  %v2532_v37 = vld [vmem:[#allocation4 + $0x184] ss:$8 sps:$4 sm:$0xff]  }
 0x103   :  { %1046 = vmatprep.subr.bf16.mxu0 %v2478_v47 }
 0x106   :  { %1047 = vmatpush1.bf16.msra.mxu0 %v2476_v48 }
 0x107   :  { %1048 = vmatprep.subr.bf16.mxu0 %v2481_v49 }
 0x10a   :  { %1049 = vmatpush1.bf16.msra.mxu0 %v2479_v50 }
 0x10b   :  { %1050 = vmatprep.subr.bf16.mxu0 %v2484_v51 }
 0x10e   :  { %1051 = vmatpush1.bf16.msra.mxu0 %v2482_v52 }
 0x10f   :  { %1052 = vmatprep.subr.bf16.mxu0 %v2487_v53 }
 0x112   :  { %1053 = vmatpush1.bf16.msra.mxu0 %v2485_v54 }
 0x113   :  { %1054 = vmatprep.subr.bf16.mxu0 %v2490_v55 }
 0x116   :  { %1055 = vmatpush1.bf16.msra.mxu0 %v2488_v56 }
 0x117   :  { %1056 = vmatprep.subr.bf16.mxu0 %v2493_v57 }
 0x11a   :  { %1057 = vmatpush1.bf16.msra.mxu0 %v2491_v58 }
 0x11b   :  { %1058 = vmatprep.subr.bf16.mxu0 %v2496_v59 }
 0x11e   :  { %1059 = vmatpush1.bf16.msra.mxu0 %v2494_v62 }
 0x11f   :  { %1060 = vmatprep.subr.bf16.mxu0 %v2499_v63  ;;  %v2506_v63 = vld [vmem:[#allocation4 + $0x100] ss:$8 sps:$4 sm:$0xff]  }
 0x122   :  { %1061 = vmatpush1.bf16.msra.mxu0 %v2497_v2 }
 0x123   :  { %1062 = vmatprep.subr.bf16.mxu0 %v2502_v4 }
 0x126   :  { %1063 = vmatpush1.bf16.msra.mxu0 %v2500_v5  ;;  %v2511_v5 = vld [vmem:[#allocation4 + $0x114] ss:$8 sps:$4 sm:$0xff]  }
 0x127   :  { %1064 = vmatprep.subr.bf16.mxu0 %v2505_v16 }
 0x12a   :  { %1065 = vmatpush1.bf16.msra.mxu0 %v2503_v17  ;;  %v2509_v17 = vld [vmem:[#allocation4 + $0x110] ss:$8 sps:$4 sm:$0xff]  }
 0x12b   :  { %1075 = vmatprep.subr.bf16.mxu0 %v2508_v20  ;;  %v2514_v20 = vld [vmem:[#allocation4 + $0x124] ss:$8 sps:$4 sm:$0xff]  }
 0x1c0   :  { %v574_v44 = vpop.f32.mrb[0].mxu0  ;;  %v3369_v45 = vpop.f32.mrb[0].mxu1 }
 0x1c1   :  { %v575_v46 = vadd.f32 %v574_v44, %v433_v41  ;;  %v576_v47 = vpop.f32.mrb[1].mxu0  ;;  %v617_v48 = vpop.f32.mrb[1].mxu1  ;;  %v2535_v41 = vld [vmem:[#allocation4 + $0x194] ss:$8 sps:$4 sm:$0xff]   ;;  %v2536_v44 = vld [vmem:[#allocation4 + $0x1a0] ss:$8 sps:$4 sm:$0xff]  }
 0x1c2   :  { %v577_v49 = vadd.f32 %v576_v47, %v437_v42  ;;  %v578_v50 = vpop.f32.mrb[2].mxu0  ;;  %v618_v51 = vadd.f32 %v617_v48, %v445_v43  ;;  %v619_v52 = vpop.f32.mrb[2].mxu1  ;;  %v2533_v42 = vld [vmem:[#allocation4 + $0x190] ss:$8 sps:$4 sm:$0xff]   ;;  %v2538_v43 = vld [vmem:[#allocation4 + $0x1a4] ss:$8 sps:$4 sm:$0xff]  }
 0x1c3   :  { %vm622_vm8 = vcmp.gt.f32.partialorder %v575_v46, 0.0  ;;  %v626_v53 = vmul.f32 0.01, %v575_v46  ;;  %v579_v54 = vpop.f32.mrb[3].mxu0  ;;  %v620_v55 = vpop.f32.mrb[3].mxu1 }
 0x1c4   :  { %vm623_vm9 = vcmp.gt.f32.partialorder %v577_v49, 0.0  ;;  %v627_v56 = vmul.f32 0.01, %v577_v49  ;;  %vm625_vm10 = vcmp.gt.f32.partialorder %v618_v51, 0.0  ;;  %v629_v58 = vmul.f32 0.01, %v618_v51 }
 0x1c5   :  { %v630_v57 = vsel %vm622_vm8, %v575_v46, %v626_v53  ;;  %v2541_v46 = vld [vmem:[#allocation4 + $0x1b4] ss:$8 sps:$4 sm:$0xff]   ;;  %v2539_v47 = vld [vmem:[#allocation4 + $0x1b0] ss:$8 sps:$4 sm:$0xff]   ;;  %v2544_v48 = vld [vmem:[#allocation4 + $0x1c4] ss:$8 sps:$4 sm:$0xff]  }
 0x1c6   :  { %v631_v59 = vsel %vm623_vm9, %v577_v49, %v627_v56  ;;  %v633_v2 = vsel %vm625_vm10, %v618_v51, %v629_v58  ;;  %v634_v4 = vpack.c.bf16 %v630_v57, %v630_v57  ;;  %v440_v49 = vsub.s32 2, %v3106_v3  ;;  %v2542_v50 = vld [vmem:[#allocation4 + $0x1c0] ss:$8 sps:$4 sm:$0xff]   ;;  %v2547_v51 = vld [vmem:[#allocation4 + $0x1d4] ss:$8 sps:$4 sm:$0xff]  }
 0x1c7   :  { %v635_v62 = vpack.c.bf16 %v631_v59, %v631_v59  ;;  %v637_v16 = vpack.c.bf16 %v633_v2, %v633_v2  ;;  %v2545_v53 = vld [vmem:[#allocation4 + $0x1d0] ss:$8 sps:$4 sm:$0xff]   ;;  %v2550_v54 = vld [vmem:[#allocation4 + $0x1e4] ss:$8 sps:$4 sm:$0xff]   ;;  %v2548_v56 = vld [vmem:[#allocation4 + $0x1e0] ss:$8 sps:$4 sm:$0xff]  }
 0x1c8   :  { %v441_v52 = vrot.slane %v3358_v38, %v440_v49  ;;  %v2553_v57 = vld [vmem:[#allocation4 + $0x1f4] ss:$8 sps:$4 sm:$0xff]   ;;  %v2551_v59 = vld [vmem:[#allocation4 + $0x1f0] ss:$8 sps:$4 sm:$0xff]   ;;  %vm2124_vm9 = vcmask 25600  }
 0x1c9   :  { %1066 = vmatprep.mubr.bf16.mxu0 %v635_v62  ;;  %v2566_v38 = vld [vmem:[%s3490_s7 + $0x70] sm:$0xff]   ;;  %v2568_v2 = vld [vmem:[%s3490_s7 + $0x78] sm:$0xff]  }
 0x1ca   :  { %1067 = vmatmul.mubr.bf16.vlgmr.msra.gmra.mrb[4].mxu0 %v634_v4  ;;  %v616_v55 = vadd.f32 %v3369_v45, %v441_v52  ;;  %v2567_v45 = vld [vmem:[%s3490_s7 + $0x30] sm:$0xff]   ;;  %2321 = vmatprep.subr.bf16.mxu1 %v2566_v38  ;;  %v2569_v4 = vld [vmem:[%s3490_s7 + $0x38] sm:$0xff]  }
 0x1cb   :  { %1076 = vmatpush1.bf16.msra.mxu0 %v2506_v63  ;;  %1107 = vmatprep.mubr.bf16.mxu0 %v637_v16  ;;  %v702_v16 = vld [vmem:[#allocation6] sm:$0x3]  ;;  %v2580_v49 = vld [vmem:[#allocation12 + $0x4] ss:$8 sps:$4 sm:$0xff]   ;;  %v2584_v38 = vld [vmem:[#allocation12 + $0x20] ss:$8 sps:$4 sm:$0xff]  }
 0x1cc   :  { %1077 = vmatprep.subr.bf16.mxu0 %v2511_v5  ;;  %v628_v58 = vmul.f32 0.01, %v616_v55  ;;  %vm624_vm11 = vcmp.gt.f32.partialorder %v616_v55, 0.0  ;;  %2322 = vmatpush3.bf16.msra.mxu1 %v2567_v45  ;;  %v2885_v5 = vmov 0.0   ;;  %v2589_v45 = vld [vmem:[#allocation12 + $0x34] ss:$8 sps:$4 sm:$0xff]  }
 0x1cd   :  { %2323 = vmatprep.subr.bf16.mxu1 %v2568_v2  ;;  %v2587_v2 = vld [vmem:[#allocation12 + $0x30] ss:$8 sps:$4 sm:$0xff]  }
 0x1ce   :  { %v632_v62 = vsel %vm624_vm11, %v616_v55, %v628_v58 }
 0x1cf   :  { %1078 = vmatpush1.bf16.msra.mxu0 %v2509_v17  ;;  %v636_v63 = vpack.c.bf16 %v632_v62, %v632_v62  ;;  %v707_v17 = vrot.slane %v702_v16, %v3121_v8  ;;  %v2581_v62 = vld [vmem:[#allocation12 + $0x10] ss:$8 sps:$4 sm:$0xff]  }
 0x1d0   :  { %1079 = vmatprep.subr.bf16.mxu0 %v2514_v20  ;;  %2324 = vmatpush3.bf16.msra.mxu1 %v2569_v4  ;;  %v711_v20 = vrot.slane %v702_v16, %v3361_v39  ;;  %v2592_v4 = vld [vmem:[#allocation12 + $0x44] ss:$8 sps:$4 sm:$0xff]   ;;  %v2595_v16 = vld [vmem:[#allocation12 + $0x54] ss:$8 sps:$4 sm:$0xff]  }
 0x1d1   :  { %2350 = vmatprep.subr.bf16.mxu1 %v2885_v5 }
 0x1d3   :  { %1080 = vmatpush1.bf16.msra.mxu0 %v2512_v21 }
 0x1d4   :  { %1081 = vmatprep.subr.bf16.mxu0 %v2517_v22 }
 0x1d7   :  { %1082 = vmatpush1.bf16.msra.mxu0 %v2515_v26 }
 0x1d8   :  { %1083 = vmatprep.subr.bf16.mxu0 %v2520_v29 }
 0x1db   :  { %1084 = vmatpush1.bf16.msra.mxu0 %v2518_v30 }
 0x1dc   :  { %1085 = vmatprep.subr.bf16.mxu0 %v2523_v31 }
 0x1df   :  { %1086 = vmatpush1.bf16.msra.mxu0 %v2521_v32 }
 0x1e0   :  { %1087 = vmatprep.subr.bf16.mxu0 %v2526_v33 }
 0x1e3   :  { %1088 = vmatpush1.bf16.msra.mxu0 %v2524_v34 }
 0x1e4   :  { %1089 = vmatprep.subr.bf16.mxu0 %v2529_v35 }
 0x1e7   :  { %1090 = vmatpush1.bf16.msra.mxu0 %v2527_v36 }
 0x1e8   :  { %1091 = vmatprep.subr.bf16.mxu0 %v2532_v37  ;;  %v2570_v37 = vld [vmem:[#allocation9] sm:$0xff]  }
 0x1eb   :  { %1092 = vmatpush1.bf16.msra.mxu0 %v2530_v40 }
 0x1ec   :  { %1093 = vmatprep.subr.bf16.mxu0 %v2535_v41  ;;  %v2571_v41 = vld [vmem:[#allocation9 + $0x8] sm:$0xff]  }
 0x1ef   :  { %1094 = vmatpush1.bf16.msra.mxu0 %v2533_v42  ;;  %v2572_v42 = vld [vmem:[#allocation9 + $0x10] sm:$0xff]  }
 0x1f0   :  { %1095 = vmatprep.subr.bf16.mxu0 %v2538_v43  ;;  %v2573_v43 = vld [vmem:[#allocation9 + $0x18] sm:$0xff]  }
 0x1f3   :  { %1096 = vmatpush1.bf16.msra.mxu0 %v2536_v44  ;;  %v2574_v44 = vld [vmem:[#allocation9 + $0x20] sm:$0xff]  }
 0x1f4   :  { %1097 = vmatprep.subr.bf16.mxu0 %v2541_v46  ;;  %v2575_v46 = vld [vmem:[#allocation9 + $0x28] sm:$0xff]  }
 0x1f7   :  { %1098 = vmatpush1.bf16.msra.mxu0 %v2539_v47  ;;  %v2576_v47 = vld [vmem:[#allocation9 + $0x30] sm:$0xff]  }
 0x1f8   :  { %1099 = vmatprep.subr.bf16.mxu0 %v2544_v48  ;;  %v2577_v48 = vld [vmem:[#allocation9 + $0x38] sm:$0xff]  }
 0x1fb   :  { %1100 = vmatpush1.bf16.msra.mxu0 %v2542_v50 }
 0x1fc   :  { %1101 = vmatprep.subr.bf16.mxu0 %v2547_v51  ;;  %v2248_v51 = vld [vmem:[#allocation7] ss:$0 sm:$0xff] }
 0x1ff   :  { %1102 = vmatpush1.bf16.msra.mxu0 %v2545_v53 }
 0x200   :  { %1103 = vmatprep.subr.bf16.mxu0 %v2550_v54 }
 0x203   :  { %1104 = vmatpush1.bf16.msra.mxu0 %v2548_v56 }
 0x204   :  { %1105 = vmatprep.subr.bf16.mxu0 %v2553_v57  ;;  %v2578_v57 = vld [vmem:[#allocation12] ss:$8 sps:$4 sm:$0xff]  }
 0x207   :  { %1106 = vmatpush1.bf16.msra.mxu0 %v2551_v59  ;;  %v2583_v59 = vld [vmem:[#allocation12 + $0x14] ss:$8 sps:$4 sm:$0xff]  }
 0x20a   :  { %1108 = vmatmul.mubr.bf16.vlgmr.msra.gmra.mrb[4].mxu0 %v636_v63  ;;  %v2586_v63 = vld [vmem:[#allocation12 + $0x24] ss:$8 sps:$4 sm:$0xff]  }
 0x2dd   :  { %v1109_v21 = vpop.f32.mrb[4].mxu0 }
 0x2de   :  { %v2405_v22 = vadd.f32 %v1109_v21, %v707_v17  ;;  %v1111_v26 = vpop.f32.mrb[5].mxu0  ;;  %v2593_v17 = vld [vmem:[#allocation12 + $0x50] ss:$8 sps:$4 sm:$0xff]   ;;  %v2596_v21 = vld [vmem:[#allocation12 + $0x60] ss:$8 sps:$4 sm:$0xff]  }
 0x2df   :  { %v2406_v29 = vadd.f32 %v1111_v26, %v711_v20  ;;  %v1113_v30 = vpop.f32.mrb[6].mxu0  ;;  %v2598_v20 = vld [vmem:[#allocation12 + $0x64] ss:$8 sps:$4 sm:$0xff]   ;;  %v2599_v26 = vld [vmem:[#allocation12 + $0x70] ss:$8 sps:$4 sm:$0xff]  }
 0x2e0   :  { %vm1116_vm12 = vcmp.gt.f32.partialorder %v2405_v22, 0.0  ;;  %v1118_v31 = vmul.f32 0.01, %v2405_v22  ;;  %v1114_v32 = vpop.f32.mrb[7].mxu0 }
 0x2e1   :  { %vm1117_vm13 = vcmp.gt.f32.partialorder %v2406_v29, 0.0  ;;  %v1119_v33 = vmul.f32 0.01, %v2406_v29 }
 0x2e2   :  { %v1120_v34 = vsel %vm1116_vm12, %v2405_v22, %v1118_v31  ;;  %v2601_v22 = vld [vmem:[#allocation12 + $0x74] ss:$8 sps:$4 sm:$0xff]  }
 0x2e3   :  { %v1121_v35 = vsel %vm1117_vm13, %v2406_v29, %v1119_v33  ;;  %v1122_v40 = vpack.c.bf16 %v1120_v34, %v1120_v34  ;;  %v2265_v29 = vld [vmem:[#allocation10] ss:$0 sm:$0xff] }
 0x2e4   :  { %v1123_v36 = vpack.c.bf16 %v1121_v35, %v1121_v35 }
 0x2e6   :  { %1291 = vmatprep.mubr.bf16.mxu1 %v1123_v36 }
 0x2e7   :  { %1292 = vmatmul.mubr.bf16.vlgmr.msra.gmra.mrb[4].mxu1 %v1122_v40  ;;  %v2602_v40 = vld [vmem:[#allocation15] ss:$8 sps:$4 sm:$0xff]  }
 0x2e8   :  { %2351 = vmatpush3.bf16.msra.mxu1 %v2570_v37  ;;  %2366 = vmatprep.mubr.msk.bf16.mxu1 %vm2886_vm14, %v2885_v5  ;;  %v2604_v37 = vld [vmem:[#allocation15 + $0x4] ss:$8 sps:$4 sm:$0xff]  }
 0x2e9   :  { %2352 = vmatprep.subr.bf16.mxu1 %v2885_v5 }
 0x2ec   :  { %2353 = vmatpush3.bf16.msra.mxu1 %v2571_v41  ;;  %v2607_v41 = vld [vmem:[#allocation15 + $0x14] ss:$8 sps:$4 sm:$0xff]  }
 0x2ed   :  { %2354 = vmatprep.subr.bf16.mxu1 %v2885_v5 }
 0x2f0   :  { %2355 = vmatpush3.bf16.msra.mxu1 %v2572_v42  ;;  %v2605_v42 = vld [vmem:[#allocation15 + $0x10] ss:$8 sps:$4 sm:$0xff]  }
 0x2f1   :  { %2356 = vmatprep.subr.bf16.mxu1 %v2885_v5 }
 0x2f4   :  { %2357 = vmatpush3.bf16.msra.mxu1 %v2573_v43  ;;  %v2610_v43 = vld [vmem:[#allocation15 + $0x24] ss:$8 sps:$4 sm:$0xff]  }
 0x2f5   :  { %2358 = vmatprep.subr.bf16.mxu1 %v2885_v5 }
 0x2f8   :  { %2359 = vmatpush3.bf16.msra.mxu1 %v2574_v44  ;;  %v2608_v44 = vld [vmem:[#allocation15 + $0x20] ss:$8 sps:$4 sm:$0xff]  }
 0x2f9   :  { %2360 = vmatprep.subr.bf16.mxu1 %v2885_v5 }
 0x2fc   :  { %2361 = vmatpush3.bf16.msra.mxu1 %v2575_v46  ;;  %v2613_v46 = vld [vmem:[#allocation15 + $0x34] ss:$8 sps:$4 sm:$0xff]  }
 0x2fd   :  { %2362 = vmatprep.subr.bf16.mxu1 %v2885_v5 }
 0x300   :  { %2363 = vmatpush3.bf16.msra.mxu1 %v2576_v47  ;;  %v2611_v47 = vld [vmem:[#allocation15 + $0x30] ss:$8 sps:$4 sm:$0xff]  }
 0x301   :  { %2364 = vmatprep.subr.bf16.mxu1 %v2885_v5  ;;  %v2590_v5 = vld [vmem:[#allocation12 + $0x40] ss:$8 sps:$4 sm:$0xff]  }
 0x304   :  { %2365 = vmatpush3.bf16.msra.mxu1 %v2577_v48  ;;  %v2616_v48 = vld [vmem:[#allocation15 + $0x44] ss:$8 sps:$4 sm:$0xff]  }
 0x305   :  { %1521 = vmatprep.subr.bf16.mxu1 %v2580_v49  ;;  %v2614_v49 = vld [vmem:[#allocation15 + $0x40] ss:$8 sps:$4 sm:$0xff]  }
 0x3ba   :  { %v2325_v50 = vpop.f32.mrb[4].mxu1 }
 0x3bb   :  { %v2326_v52 = vpop.f32.mrb[5].mxu1 }
 0x3bc   :  { %v2327_v53 = vadd.f32 %v2326_v52, %v2325_v50  ;;  %v2328_v54 = vpop.f32.mrb[6].mxu1  ;;  %v2617_v50 = vld [vmem:[#allocation15 + $0x50] ss:$8 sps:$4 sm:$0xff]   ;;  %v2620_v52 = vld [vmem:[#allocation15 + $0x60] ss:$8 sps:$4 sm:$0xff]  }
 0x3bd   :  { %v2329_v55 = vpop.f32.mrb[7].mxu1  ;;  %v2623_v54 = vld [vmem:[#allocation15 + $0x70] ss:$8 sps:$4 sm:$0xff]  }
 0x3be   :  { %v1294_v56 = vadd.f32 %v2327_v53, %v2248_v51  ;;  %v2622_v51 = vld [vmem:[#allocation15 + $0x64] ss:$8 sps:$4 sm:$0xff]   ;;  %v2625_v53 = vld [vmem:[#allocation15 + $0x74] ss:$8 sps:$4 sm:$0xff]  }
 0x3bf   :  { %v1429_v55 = vld [vmem:[#allocation13] sm:$0x3] }
 0x3c0   :  { %v1299_v58 = vpack.c.bf16 %v1294_v56, %v1294_v56  ;;  %v1438_v56 = vrot.slane %v1429_v55, %v3361_v39 }
 0x3c2   :  { %2367 = vmatmul.mubr.bf16.vlgmr.msra.gmra.mrb[8].mxu1 %v1299_v58 }
 0x3c3   :  { %1522 = vmatpush1.bf16.msra.mxu1 %v2578_v57  ;;  %1553 = vmatprep.mubr.bf16.mxu1 %v2884_v0 }
 0x3c4   :  { %1523 = vmatprep.subr.bf16.mxu1 %v2583_v59 }
 0x3c7   :  { %1524 = vmatpush1.bf16.msra.mxu1 %v2581_v62 }
 0x3c8   :  { %1525 = vmatprep.subr.bf16.mxu1 %v2586_v63 }
 0x3cb   :  { %1526 = vmatpush1.bf16.msra.mxu1 %v2584_v38 }
 0x3cc   :  { %1527 = vmatprep.subr.bf16.mxu1 %v2589_v45 }
 0x3cf   :  { %1528 = vmatpush1.bf16.msra.mxu1 %v2587_v2 }
 0x3d0   :  { %1529 = vmatprep.subr.bf16.mxu1 %v2592_v4 }
 0x3d3   :  { %1530 = vmatpush1.bf16.msra.mxu1 %v2590_v5  ;;  %v1434_v5 = vrot.slane %v1429_v55, %v3121_v8 }
 0x3d4   :  { %1531 = vmatprep.subr.bf16.mxu1 %v2595_v16 }
 0x3d7   :  { %1532 = vmatpush1.bf16.msra.mxu1 %v2593_v17  ;;  %v1570_v17 = vld [vmem:[%s3484_s1] sm:$0x3] }
 0x3d8   :  { %1533 = vmatprep.subr.bf16.mxu1 %v2598_v20 }
 0x3db   :  { %1534 = vmatpush1.bf16.msra.mxu1 %v2596_v21 }
 0x3dc   :  { %1535 = vmatprep.subr.bf16.mxu1 %v2601_v22 }
 0x3df   :  { %1536 = vmatpush1.bf16.msra.mxu1 %v2599_v26 }
 0x3e0   :  { %1682 = vmatprep.subr.bf16.mxu1 %v2604_v37  ;;  %v1834_v37 = vld [vmem:[%s3485_s2 + $0x28] sm:$0xff] }
 0x495   :  { %v1405_v30 = vpop.f32.mrb[8].mxu1 }
 0x496   :  { %v1406_v31 = vadd.f32 %v2265_v29, %v1405_v30  ;;  %v2368_v32 = vpop.f32.mrb[9].mxu1  ;;  %v1829_v30 = vld [vmem:[%s3485_s2] sm:$0xff] }
 0x497   :  { %v1408_v33 = vpop.f32.mrb[10].mxu1 }
 0x498   :  { %v1411_v34 = vmax.f32 %v1406_v31, 0.0  ;;  %v2369_v35 = vpop.f32.mrb[11].mxu1  ;;  %v1830_v31 = vld [vmem:[%s3485_s2 + $0x8] sm:$0xff]  ;;  %v1831_v33 = vld [vmem:[%s3485_s2 + $0x10] sm:$0xff] }
 0x499   :  { %v2389_v32 = vpack.c.bf16 %v1830_v31, %v1829_v30 }
 0x49a   :  { %v1412_v36 = vpack.c.bf16 %v1411_v34, %v1411_v34  ;;  %v1832_v34 = vld [vmem:[%s3485_s2 + $0x18] sm:$0xff] }
 0x49b   :  { %2390 = vmatprep.subr.bf16.mxu0 %v2389_v32  ;;  %v2393_v35 = vpack.c.bf16 %v1832_v34, %v1831_v33 }
 0x49c   :  { %1554 = vmatmul.mubr.bf16.vlgmr.msra.gmra.mrb[12].mxu1 %v1412_v36  ;;  %2392 = vmatpush3.bf16.msra.mxu0 %v2389_v32  ;;  %v1833_v36 = vld [vmem:[%s3485_s2 + $0x20] sm:$0xff] }
 0x49d   :  { %1714 = vmatprep.mubr.bf16.mxu1 %v2884_v0  ;;  %1683 = vmatpush1.bf16.msra.mxu1 %v2602_v40  ;;  %v2619_v0 = vld [vmem:[#allocation15 + $0x54] ss:$8 sps:$4 sm:$0xff]   ;;  %v1835_v40 = vld [vmem:[%s3485_s2 + $0x30] sm:$0xff] }
 0x49e   :  { %1684 = vmatprep.subr.bf16.mxu1 %v2607_v41  ;;  %2394 = vmatprep.subr.bf16.mxu0 %v2393_v35  ;;  %v2397_v41 = vpack.c.bf16 %v1834_v37, %v1833_v36 }
 0x4a0   :  { %2396 = vmatpush3.bf16.msra.mxu0 %v2393_v35 }
 0x4a1   :  { %1685 = vmatpush1.bf16.msra.mxu1 %v2605_v42  ;;  %v1836_v42 = vld [vmem:[%s3485_s2 + $0x38] sm:$0xff]  ;;  %2398 = vmatprep.subr.bf16.mxu0 %v2397_v41 }
 0x4a2   :  { %1686 = vmatprep.subr.bf16.mxu1 %v2610_v43  ;;  %v2401_v43 = vpack.c.bf16 %v1836_v42, %v1835_v40 }
 0x4a4   :  { %2400 = vmatpush3.bf16.msra.mxu0 %v2397_v41 }
 0x4a5   :  { %1687 = vmatpush1.bf16.msra.mxu1 %v2608_v44  ;;  %2402 = vmatprep.subr.bf16.mxu0 %v2401_v43  ;;  %v1590_v44 = vld [vmem:[#allocation16] sm:$0x3] }
 0x4a6   :  { %1688 = vmatprep.subr.bf16.mxu1 %v2613_v46  ;;  %v2887_v46 = vmov 1966171168  }
 0x4a8   :  { %2404 = vmatpush3.bf16.msra.mxu0 %v2401_v43 }
 0x4a9   :  { %1689 = vmatpush1.bf16.msra.mxu1 %v2611_v47  ;;  %v2027_v47 = vunpack.c.l.s4 %v2887_v46 }
 0x4aa   :  { %1690 = vmatprep.subr.bf16.mxu1 %v2616_v48  ;;  %v2888_v48 = vmov 1983009808  }
 0x4ad   :  { %1691 = vmatpush1.bf16.msra.mxu1 %v2614_v49  ;;  %v1741_v49 = vunpack.c.l.s4 %v2888_v48 }
 0x4ae   :  { %1692 = vmatprep.subr.bf16.mxu1 %v2619_v0  ;;  %v1595_v0 = vrot.slane %v1590_v44, %v3121_v8 }
 0x4b1   :  { %1693 = vmatpush1.bf16.msra.mxu1 %v2617_v50  ;;  %v1599_v50 = vrot.slane %v1590_v44, %v3361_v39 }
 0x4b2   :  { %1694 = vmatprep.subr.bf16.mxu1 %v2622_v51  ;;  %v2028_v51 = vunpack.c.0.s8 %v2027_v47 }
 0x4b5   :  { %1695 = vmatpush1.bf16.msra.mxu1 %v2620_v52  ;;  %v1742_v52 = vunpack.c.0.s8 %v1741_v49 }
 0x4b6   :  { %1696 = vmatprep.subr.bf16.mxu1 %v2625_v53 }
 0x4b9   :  { %1697 = vmatpush1.bf16.msra.mxu1 %v2623_v54 }
 0x56f   :  { %v1555_v57 = vpop.f32.mrb[12].mxu1 }
 0x570   :  { %v1557_v58 = vpop.f32.mrb[13].mxu1  ;;  %v1556_v21 = vadd.f32 %v1555_v57, %v1434_v5  ;;  %v2031_v57 = vsub.s32 %v2028_v51, %v3106_v3 }
 0x571   :  { %v1558_v59 = vadd.f32 %v1557_v58, %v1438_v56  ;;  %v1559_v62 = vpop.f32.mrb[14].mxu1 }
 0x572   :  { %v1560_v63 = vpop.f32.mrb[15].mxu1 }
 0x573   :  { %v2290_v38 = vmul.f32 -1.442695, %v1558_v59  ;;  %v1745_v63 = vsub.s32 %v1742_v52, %v3106_v3 }
 0x575   :  { %2626 = vpow2.f32 %v2290_v38 }
 0x57f   :  { %v2627_v45 = vpop.eup %2626 }
 0x580   :  { %v1565_v2 = vadd.f32 1.0, %v2627_v45 }
 0x582   :  { %2628 = vrcp.f32 %v1565_v2 }
 0x58c   :  { %v2629_v4 = vpop.eup %2628 }
 0x58d   :  { %v1568_v16 = vmul.f32 0.9, %v2629_v4 }
 0x58f   :  { %v1569_v20 = vadd.f32 0.1, %v1568_v16 }
 0x591   :  { %v1571_v22 = vmul.f32 %v1570_v17, %v1569_v20 }
 0x593   :  { %v1572_v26 = vadd.f32 %v1571_v22, %v1556_v21 }
 0x595   :  { %v1573_v29 = vpack.c.bf16 %v1572_v26, %v1572_v26 }
 0x597   :  { %1715 = vmatmul.mubr.bf16.vlgmr.msra.gmra.mrb[16].mxu1 %v1573_v29 }
 0x66a   :  { %v1716_v53 = vpop.f32.mrb[16].mxu1 }
 0x66b   :  { %v1717_v54 = vadd.f32 %v1716_v53, %v1595_v0  ;;  %v1718_v55 = vpop.f32.mrb[17].mxu1 }
 0x66c   :  { %v1719_v56 = vadd.f32 %v1718_v55, %v1599_v50  ;;  %v1720_v58 = vpop.f32.mrb[18].mxu1 }
 0x66d   :  { %v1724_v59 = vrot.slane %v1717_v54, 1  ;;  %v1727_v62 = vadd.f32 %v1717_v54, %v3311_v27  ;;  %v1721_v38 = vpop.f32.mrb[19].mxu1 }
 0x66e   :  { %v2024_v45 = vmul.f32 %v1719_v56, %v1719_v56 }
 0x66f   :  { %v1728_v2 = vadd.f32 %v1724_v59, %v3313_v28  ;;  %v1732_v39 = vrot.slane %v1727_v62, %v3121_v8 }
 0x670   :  { %v2032_v4 = vrot.slane %v2024_v45, %v2031_v57 }
 0x671   :  { %v1736_v5 = vrot.slane %v1728_v2, %v3121_v8  ;;  %v1739_v16 = vcombine.high %v1732_v39, %v1732_v39  ;;  %v1746_v17 = vrot.slane %v1732_v39, %v1745_v63 }
 0x672   :  { %v2033_v20 = vcombine.high %v2032_v4, %v2032_v4  ;;  %v2040_v21 = vrot.slane %v2032_v4, %v2031_v57 }
 0x673   :  { %v1753_v22 = vrot.slane %v1739_v16, %v1745_v63  ;;  %v1754_v26 = vcombine.high %v1746_v17, %v1746_v17  ;;  %v1756_v29 = vcombine.high %v1736_v5, %v1736_v5  ;;  %v1763_v30 = vrot.slane %v1736_v5, %v1745_v63 }
 0x674   :  { %v1773_v27 = vrot.slane %v1746_v17, 1  ;;  %v2051_v31 = vrot.slane %v2040_v21, %v3121_v8  ;;  %v1797_v28 = vadd.f32 %v1746_v17, %v3216_v60  ;;  %v2047_v40 = vrot.slane %v2033_v20, %v2031_v57 }
 0x675   :  { %v1770_v32 = vrot.slane %v1756_v29, %v1745_v63  ;;  %v1771_v33 = vcombine.high %v1763_v30, %v1763_v30  ;;  %v1774_v34 = vrot.slane %v1754_v26, 1  ;;  %v1777_v35 = vrot.slane %v1763_v30, 1 }
 0x676   :  { %v1798_v36 = vadd.f32 %v1773_v27, %v3218_v61  ;;  %v1799_v37 = vadd.f32 %v1754_v26, %v3226_v6  ;;  %2057 = vperm.xlu0 %2432, %v2051_v31   ;;  %v1755_v41 = vcombine.high %v1753_v22, %v1753_v22  ;;  %v1801_v46 = vadd.f32 %v1753_v22, %v3236_v12 }
 0x677   :  { %v1778_v42 = vrot.slane %v1771_v33, 1  ;;  %v1779_v43 = vrot.slane %v1770_v32, 1  ;;  %v1800_v44 = vadd.f32 %v1774_v34, %v3228_v7  ;;  %v1805_v47 = vadd.f32 %v1763_v30, %v3230_v9 }
 0x678   :  { %v1806_v48 = vadd.f32 %v1777_v35, %v3232_v10  ;;  %v1807_v60 = vadd.f32 %v1771_v33, %v3234_v11  ;;  %v1775_v49 = vrot.slane %v1753_v22, 1  ;;  %v1809_v6 = vadd.f32 %v1770_v32, %v3242_v15 }
 0x679   :  { %v1808_v61 = vadd.f32 %v1778_v42, %v3240_v14  ;;  %v1813_v0 = vmul.f32 %v1797_v28, %v1797_v28  ;;  %v1772_v50 = vcombine.high %v1770_v32, %v1770_v32  ;;  %v1814_v51 = vmul.f32 %v1798_v36, %v1798_v36 }
 0x67a   :  { %v1815_v52 = vmul.f32 %v1799_v37, %v1799_v37  ;;  %v1816_v53 = vmul.f32 %v1800_v44, %v1800_v44  ;;  %v1810_v7 = vadd.f32 %v1779_v43, %v3249_v19  ;;  %v1817_v54 = vmul.f32 %v1801_v46, %v1801_v46 }
 0x67b   :  { %v1821_v12 = vmul.f32 %v1805_v47, %v1805_v47  ;;  %v1822_v55 = vmul.f32 %v1806_v48, %v1806_v48  ;;  %v1823_v9 = vmul.f32 %v1807_v60, %v1807_v60  ;;  %v1824_v56 = vmul.f32 %v1808_v61, %v1808_v61 }
 0x67c   :  { %v1860_v10 = vrot.slane %v1814_v51, %v3121_v8  ;;  %v1864_v11 = vrot.slane %v1815_v52, %v3121_v8  ;;  %v1825_v57 = vmul.f32 %v1809_v6, %v1809_v6  ;;  %v1856_v14 = vrot.slane %v1813_v0, %v3121_v8 }
 0x67d   :  { %v1892_v15 = vrot.slane %v1822_v55, %v3121_v8  ;;  %v2055_v58 = vrot.slane %v2047_v40, %v3121_v8  ;;  %v1776_v59 = vrot.slane %v1755_v41, 1  ;;  %v1802_v62 = vadd.f32 %v1775_v49, %v3238_v13 }
 0x67e   :  { %v1803_v19 = vadd.f32 %v1755_v41, %v3247_v18  ;;  %v1868_v63 = vrot.slane %v1816_v53, %v3121_v8  ;;  %v1872_v38 = vrot.slane %v1817_v54, %v3121_v8  ;;  %v1917_v45 = vsel %vm367_vm0, %v1860_v10, %v1856_v14 }
 0x67f   :  { %2061 = vperm.xlu0 %2432, %v2055_v58   ;;  %v1780_v2 = vrot.slane %v1772_v50, 1  ;;  %v1811_v39 = vadd.f32 %v1772_v50, %v3260_v24  ;;  %v1804_v4 = vadd.f32 %v1776_v59, %v3258_v23  ;;  %v1818_v5 = vmul.f32 %v1802_v62, %v1802_v62 }
 0x680   :  { %v1819_v16 = vmul.f32 %v1803_v19, %v1803_v19  ;;  %v1918_v17 = vsel %vm369_vm1, %v1864_v11, %v1917_v45  ;;  %v1888_v13 = vrot.slane %v1821_v12, %v3121_v8  ;;  %v1896_v18 = vrot.slane %v1823_v9, %v3121_v8 }
 0x681   :  { %v1919_v20 = vsel %vm371_vm2, %v1868_v63, %v1918_v17  ;;  %v1812_v21 = vadd.f32 %v1780_v2, %v3262_v25  ;;  %v1820_v22 = vmul.f32 %v1804_v4, %v1804_v4  ;;  %v1876_v26 = vrot.slane %v1818_v5, %v3121_v8 }
 0x682   :  { %v1920_v29 = vsel %vm373_vm3, %v1872_v38, %v1919_v20  ;;  %v1826_v24 = vmul.f32 %v1810_v7, %v1810_v7  ;;  %v1880_v23 = vrot.slane %v1819_v16, %v3121_v8  ;;  %v1827_v30 = vmul.f32 %v1811_v39, %v1811_v39 }
 0x683   :  { %v1900_v27 = vrot.slane %v1824_v56, %v3121_v8  ;;  %v1884_v31 = vrot.slane %v1820_v22, %v3121_v8  ;;  %v1921_v32 = vsel %vm375_vm4, %v1876_v26, %v1920_v29  ;;  %v1828_v33 = vmul.f32 %v1812_v21, %v1812_v21 }
 0x684   :  { %v1924_v34 = vsel %vm367_vm0, %v1892_v15, %v1888_v13  ;;  %v1922_v25 = vsel %vm377_vm5, %v1880_v23, %v1921_v32  ;;  %v1904_v28 = vrot.slane %v1825_v57, %v3121_v8  ;;  %v1908_v37 = vrot.slane %v1826_v24, %v3121_v8 }
 0x685   :  { %v1925_v35 = vsel %vm369_vm1, %v1896_v18, %v1924_v34  ;;  %v1923_v36 = vsel %vm379_vm6, %v1884_v31, %v1922_v25  ;;  %v1912_v41 = vrot.slane %v1827_v30, %v3121_v8  ;;  %v1916_v43 = vrot.slane %v1828_v33, %v3121_v8 }
 0x686   :  { %v1926_v40 = vsel %vm371_vm2, %v1900_v27, %v1925_v35  ;;  %2386 = vmatprep.mubr.msk.f32.mxu0 %vm390_vm7, %v1923_v36  ;;  %v2112_v24 = vand.u32 127, %v303_v1 }
 0x687   :  { %v1927_v42 = vsel %vm373_vm3, %v1904_v28, %v1926_v40 }
 0x688   :  { %v1928_v44 = vsel %vm375_vm4, %v1908_v37, %v1927_v42  ;;  %vm2068_vm4 = vcmask 15360   ;;  %v2113_v23 = vadd.s32 4, %v2112_v24 }
 0x689   :  { %v1929_v46 = vsel %vm377_vm5, %v1912_v41, %v1928_v44 }
 0x68a   :  { %v1930_v47 = vsel %vm379_vm6, %v1916_v43, %v1929_v46  ;;  %v2116_v30 = vsub.s32 %v2113_v23, %v3106_v3 }
 0x68b   :  { %2387 = vmatmul.mubr.msk.f32.vlgmr.msra.gmra.mrb[8].mxu0 %vm390_vm7, %v1930_v47 }
 0x6f5   :  { %v2058_v49 = vpop.permute.xlu0 %2057 }
 0x6fe   :  { %v2062_v54 = vpop.permute.xlu0 %2061 }
 0x75e   :  { %v2388_v48 = vpop.f32.mrb[8].mxu0 }
 0x75f   :  { %2630 = vrsqrt.f32 %v2388_v48  ;;  %v2001_v60 = vpop.f32.mrb[9].mxu0  ;;  %vm2019_vm15 = vcmp.eq.f32.partialorder %v2388_v48, inf  ;;  %v2022_v51 = vand.u32 2147483648, %v2388_v48  ;;  %vm2021_vm2 = vcmp.eq.f32.partialorder %v2388_v48, 0.0 }
 0x760   :  { %2632 = vrsqrt.f32 %v2001_v60  ;;  %vm2012_vm1 = vcmp.eq.f32.partialorder %v2001_v60, inf  ;;  %v2015_v8 = vand.u32 2147483648, %v2001_v60  ;;  %vm2014_vm3 = vcmp.eq.f32.partialorder %v2001_v60, 0.0 }
 0x769   :  { %v2631_v61 = vpop.eup %2630 }
 0x76a   :  { %v2633_v6 = vpop.eup %2632  ;;  %v2018_v0 = vmul.f32 %v2631_v61, %v2388_v48 }
 0x76b   :  { %v2011_v50 = vmul.f32 %v2633_v6, %v2001_v60 }
 0x76c   :  { %v2020_v52 = vsel %vm2019_vm15, %v2388_v48, %v2018_v0 }
 0x76d   :  { %v2013_v53 = vsel %vm2012_vm1, %v2001_v60, %v2011_v50  ;;  %v2023_v7 = vsel %vm2021_vm2, %v2022_v51, %v2020_v52 }
 0x76e   :  { %v2016_v12 = vsel %vm2014_vm3, %v2015_v8, %v2013_v53  ;;  %v2065_v9 = vsub.f32 %v2023_v7, %v2062_v54 }
 0x76f   :  { %v2064_v55 = vsub.f32 %v2016_v12, %v2058_v49 }
 0x770   :  { %v2067_v11 = vmul.f32 %v2065_v9, %v2065_v9 }
 0x771   :  { %v2066_v56 = vmul.f32 %v2064_v55, %v2064_v55 }
 0x772   :  { %v2072_v57 = vsel %vm2068_vm4, %v2067_v11, 0.0 }
 0x773   :  { %v2069_v10 = vsel %vm2068_vm4, %v2066_v56, 0.0 }
 0x774   :  { %2070 = vadd.xlane.f32.xlu1 %v2069_v10 }
 0x778   :  { %2073 = vadd.xlane.f32.xlu1 %v2072_v57 }
 0x801   :  { %v2071_v14 = vpop.xlane.xlu1 %2070 }
 0x802   :  { %2634 = vrsqrt.f32 %v2071_v14  ;;  %vm2077_vm5 = vcmp.eq.f32.partialorder %v2071_v14, inf  ;;  %v2080_v62 = vand.u32 2147483648, %v2071_v14  ;;  %vm2079_vm6 = vcmp.eq.f32.partialorder %v2071_v14, 0.0 }
 0x805   :  { %v2074_v15 = vpop.xlane.xlu1 %2073 }
 0x806   :  { %2636 = vrsqrt.f32 %v2074_v15  ;;  %vm2084_vm7 = vcmp.eq.f32.partialorder %v2074_v15, inf  ;;  %v2087_v39 = vand.u32 2147483648, %v2074_v15  ;;  %vm2086_vm8 = vcmp.eq.f32.partialorder %v2074_v15, 0.0 }
 0x80c   :  { %v2635_v58 = vpop.eup %2634 }
 0x80d   :  { %v2076_v59 = vmul.f32 %v2635_v58, %v2071_v14 }
 0x80f   :  { %v2078_v19 = vsel %vm2077_vm5, %v2071_v14, %v2076_v59 }
 0x810   :  { %v2637_v63 = vpop.eup %2636  ;;  %v2081_v38 = vsel %vm2079_vm6, %v2080_v62, %v2078_v19 }
 0x811   :  { %v2083_v45 = vmul.f32 %v2637_v63, %v2074_v15  ;;  %v2089_v2 = vsub.f32 0.0, %v2081_v38 }
 0x813   :  { %v2093_v4 = vrot.slane %v2089_v2, 4  ;;  %v2085_v5 = vsel %vm2084_vm7, %v2074_v15, %v2083_v45 }
 0x814   :  { %v2088_v16 = vsel %vm2086_vm8, %v2087_v39, %v2085_v5 }
 0x815   :  { %v2097_v17 = vsub.f32 %v2089_v2, %v2093_v4  ;;  %v2090_v13 = vsub.f32 0.0, %v2088_v16 }
 0x817   :  { %v2099_v18 = vadd.f32 1.0, %v2097_v17  ;;  %v2094_v20 = vrot.slane %v2090_v13, 4 }
 0x819   :  { %v2101_v21 = vmax.f32 %v2099_v18, 0.0  ;;  %v2098_v22 = vsub.f32 %v2090_v13, %v2094_v20 }
 0x81b   :  { %2106 = vperm.xlu0 %2432, %v2101_v21   ;;  %v2100_v26 = vadd.f32 1.0, %v2098_v22 }
 0x81d   :  { %v2102_v29 = vmax.f32 %v2100_v26, 0.0 }
 0x81f   :  { %2109 = vperm.xlu1 %2433, %v2102_v29  }
 0x89a   :  { %v2107_v27 = vpop.permute.xlu0 %2106 }
 0x89b   :  { %v2117_v32 = vrot.slane %v2107_v27, %v2116_v30 }
 0x89e   :  { %v2110_v31 = vpop.permute.xlu1 %2109 }
 0x89f   :  { %v2121_v33 = vrot.slane %v2110_v31, %v2116_v30 }
 0x8a1   :  { %v2122_v34 = vsel %vm367_vm0, %v2121_v33, %v2117_v32 }
 0x8a2   :  { %v2125_v25 = vsel %vm2124_vm9, %v2122_v34, 0.0 }
 0x8a3   :  { %2126 = vadd.xlane.f32.xlu0 %v2125_v25 }
 0x930   :  { %v2127_v28 = vpop.xlane.xlu0 %2126 }
 0x931   :  { %v2128_v35 = vrot.slane %v2127_v28, 4 }
 0x933   :  { %v2129_v36 = vadd.f32 %v2128_v35, %v2127_v28 }
 0x935   :  { %v2130_v37 = vrot.slane %v2129_v36, 2 }
 0x937   :  { %v2131_v40 = vadd.f32 %v2130_v37, %v2129_v36 }
 0x939   :  { %v2132_v41 = vrot.slane %v2131_v40, 1 }
 0x93b   :  { %v2133_v42 = vadd.f32 %v2132_v41, %v2131_v40 }
 0x93d   :  { %2411 = vpush %v2133_v42 }
 0x96e   :  { %s2412_s2 = spop %2411 }
 0x96f   :  { %s2137_s19 = smul.f32 0.125, %s2412_s2 }
 0x971   :  { %v2138_v1 = vstv %s2137_s19 }
 0x972   :  { %2139 = vst [vmem:[%s3500_s10] sm:$0xff] %v2138_v1 }
 0x973   :  { %2144 = vsyncpa [#allocation3], 1 }
 0x974   :  { %2145 = vsyncpa [#allocation5], 1 }
 0x975   :  { %2146 = vsyncpa [#allocation8], 1 }
 0x976   :  { %2147 = vsyncpa [#allocation11], 1 }
 0x977   :  { %2148 = vsyncpa [#allocation14], 1 }
 0x978   :  { %2149 = vsyncpa [#allocation17], 1 }

</bundles_post_ra>
